<compile_context>
chip_gen: v5e
topology: v5e:2x2
jax: 0.10.0
libtpu: 0.0.40
codegen_flags: <defaults>
</compile_context>

<pallas_src>
import functools

import jax
import jax.numpy as jnp
from jax.experimental import pallas as pl
from jax.experimental.pallas import tpu as pltpu


def _resblock_kernel(xp_ref, col_ref, w1_ref, w2_ref, o_ref, xbf_ref, pad2_ref,
                     *, C, H, W):
    """One batch element per grid step.

    xp_ref  : (1, C, NX) f32  VMEM  reflection-padded input, flattened (+2 tail lanes)
    col_ref : (1, NW)    i32  VMEM  lane index mod (W+2)
    w1_ref  : (9, C, C)  bf16 VMEM  per-tap (Cout, Cin) matrices, tap k = 3*dy + dx
    w2_ref  : (9, C, C)  bf16 VMEM
    o_ref   : (1, C, NW) f32  VMEM  output in padded-flat coords (wrapper compacts)
    xbf_ref : (C, NX)    bf16 VMEM  scratch: bf16 copy of the padded input
    pad2_ref: (C, NX)    bf16 VMEM  scratch: reflection-padded intermediate
    """
    Wp = W + 2                     # padded row stride
    NW = H * Wp                    # working width (valid outputs at col < W)
    NX = (H + 2) * Wp + 2          # padded-input / scratch width
    eps = 1e-5
    inv_cnt = 1.0 / float(H * W)

    col = col_ref[...]             # (1, NW) int32
    valid = col < W                # True on real output columns

    tap_offsets = [dy * Wp + dx for dy in range(3) for dx in range(3)]

    def conv9(src_ref, w_ref):
        # out[o, j] = sum_{k, i} w[k, o, i] * src[i, j + off_k]
        # 9 bf16 MXU matmuls, f32 accumulation, tree-summed partials.
        parts = [jnp.dot(w_ref[k], src_ref[:, off:off + NW],
                         preferred_element_type=jnp.float32)
                 for k, off in enumerate(tap_offsets)]
        while len(parts) > 1:
            nxt = []
            for i in range(0, len(parts) - 1, 2):
                nxt.append(parts[i] + parts[i + 1])
            if len(parts) % 2:
                nxt.append(parts[-1])
            parts = nxt
        return parts[0]

    def instance_norm(a):
        # single masked pass (sum + sum-of-squares); biased var, eps=1e-5, no affine
        m = jnp.where(valid, a, 0.0)
        s1 = jnp.sum(m, axis=-1, keepdims=True)
        s2 = jnp.sum(m * m, axis=-1, keepdims=True)
        mean = s1 * inv_cnt
        var = jnp.maximum(s2 * inv_cnt - mean * mean, 0.0)
        return (a - mean) * jax.lax.rsqrt(var + eps)

    # One bf16 cast of the padded input; every tap slice then moves bf16 data.
    xbf_ref[...] = xp_ref[0].astype(jnp.bfloat16)

    # ---- conv1 -> instance norm -> LeakyReLU(0.2) -----------------------------
    a1 = instance_norm(conv9(xbf_ref, w1_ref))
    a1 = jnp.where(a1 >= 0, a1, 0.2 * a1)

    # ---- build reflection-padded a1 in scratch (padded-flat layout) -----------
    # A single bulk store at offset Wp+1 puts a1's valid pixels on the pad2
    # interior; a1's junk columns land exactly on the border lanes, so they are
    # overwritten in registers with the reflected values first:
    #   col == W   -> right border of this row  = a1[j - 2]
    #   col == W+1 -> left  border of next row  = a1[j + 2]
    # (roll wrap-arounds are never selected / land on the bottom row, which is
    #  rewritten by the reflected-row copy below).
    fix = jnp.where(col == W, jnp.roll(a1, 2, axis=-1),
                    jnp.where(col == W + 1, jnp.roll(a1, -2, axis=-1), a1))
    pad2_ref[:, NX - 2:NX] = jnp.zeros((C, 2), jnp.bfloat16)     # tail lanes only
    pad2_ref[:, Wp + 1:Wp + 1 + NW] = fix.astype(jnp.bfloat16)
    pad2_ref[:, Wp:Wp + 1] = a1[:, 1:2].astype(jnp.bfloat16)     # row-1 left border
    # reflected top / bottom rows (read regions written above):
    pad2_ref[:, 0:Wp] = pad2_ref[:, 2 * Wp:3 * Wp]
    pad2_ref[:, (H + 1) * Wp:(H + 2) * Wp] = pad2_ref[:, (H - 1) * Wp:H * Wp]

    # ---- conv2 -> instance norm -> residual add (f32, original-precision x) ---
    n2 = instance_norm(conv9(pad2_ref, w2_ref))
    x_interior = xp_ref[0, :, Wp + 1:Wp + 1 + NW]                # original x, f32
    o_ref[0] = (n2 + x_interior).astype(o_ref.dtype)


def residual_block(x, w1, w2):
    """x: (B, C, H, W) f32, w1: (C, C, 3, 3), w2: (C, C, 3, 3) (OIHW, no bias)."""
    B, C, H, W = x.shape
    assert w1.shape == (C, C, 3, 3) and w2.shape == (C, C, 3, 3), \
        "ResidualBlock requires dim_in == dim_out (residual add)"
    assert H >= 2 and W >= 2, "ReflectionPad2d(1) needs H, W >= 2"

    Wp, Hp = W + 2, H + 2
    NW = H * Wp                 # kernel working width (2 junk cols per row)
    NX = Hp * Wp + 2            # padded-input width (+2 so the last tap slice fits)

    # Reflection-pad the block input once in XLA; flatten to a lane-dense slab.
    xp = jnp.pad(x.astype(jnp.float32), ((0, 0), (0, 0), (1, 1), (1, 1)),
                 mode="reflect")
    xp = xp.reshape(B, C, Hp * Wp)
    xp = jnp.pad(xp, ((0, 0), (0, 0), (0, 2)))

    # Per-tap weight matrices, MXU-friendly and bf16: (9, Cout, Cin), VMEM-resident.
    w1_t = jnp.transpose(w1.astype(jnp.float32), (2, 3, 0, 1)).reshape(9, C, C)
    w2_t = jnp.transpose(w2.astype(jnp.float32), (2, 3, 0, 1)).reshape(9, C, C)
    w1_t = w1_t.astype(jnp.bfloat16)
    w2_t = w2_t.astype(jnp.bfloat16)

    # Lane index modulo the padded row stride (marks the 2 junk columns / row).
    col = (jnp.arange(NW, dtype=jnp.int32) % Wp).reshape(1, NW)

    kernel = functools.partial(_resblock_kernel, C=C, H=H, W=W)
    out_flat = pl.pallas_call(
        kernel,
        out_shape=jax.ShapeDtypeStruct((B, C, NW), x.dtype),
        grid=(B,),
        in_specs=[
            pl.BlockSpec((1, C, NX), lambda b: (b, 0, 0)),
            pl.BlockSpec((1, NW), lambda b: (0, 0)),
            pl.BlockSpec((9, C, C), lambda b: (0, 0, 0)),
            pl.BlockSpec((9, C, C), lambda b: (0, 0, 0)),
        ],
        out_specs=pl.BlockSpec((1, C, NW), lambda b: (b, 0, 0)),
        scratch_shapes=[pltpu.VMEM((C, NX), jnp.bfloat16),
                        pltpu.VMEM((C, NX), jnp.bfloat16)],
        compiler_params=pltpu.CompilerParams(
            dimension_semantics=("parallel",)),
    )(xp, col, w1_t, w2_t)

    # Drop the 2 junk columns per row: (B, C, H*(W+2)) -> (B, C, H, W).
    return out_flat.reshape(B, C, H, Wp)[:, :, :, :W]


def residual_block_ref(x, w1, w2):
    """Pure-JAX reference matching the PyTorch module (full f32)."""
    def rpad(a):
        return jnp.pad(a, ((0, 0), (0, 0), (1, 1), (1, 1)), mode="reflect")

    def conv(a, w):
        return jax.lax.conv_general_dilated(
            a, w, window_strides=(1, 1), padding="VALID",
            dimension_numbers=("NCHW", "OIHW", "NCHW"),
            precision=jax.lax.Precision.HIGHEST)

    def inorm(a):
        m = jnp.mean(a, axis=(2, 3), keepdims=True)
        v = jnp.mean((a - m) ** 2, axis=(2, 3), keepdims=True)
        return (a - m) * jax.lax.rsqrt(v + 1e-5)

    out = inorm(conv(rpad(x), w1))
    out = jnp.where(out >= 0, out, 0.2 * out)
    out = inorm(conv(rpad(out), w2))
    return out + x


if __name__ == "__main__":
    B, C, H, W = 2, 4, 16, 16      # dim_in == dim_out == 4 (required by residual add)
    key = jax.random.PRNGKey(0)
    kx, k1, k2 = jax.random.split(key, 3)

    x = jax.random.normal(kx, (B, C, H, W), dtype=jnp.float32)
    # use_bias=False -> no conv biases; deterministic synthetic weights
    w1 = jax.random.normal(k1, (C, C, 3, 3), dtype=jnp.float32) * 0.1
    w2 = jax.random.normal(k2, (C, C, 3, 3), dtype=jnp.float32) * 0.1

    out = residual_block(x, w1, w2)
    out = jax.block_until_ready(out)

    ref = residual_block_ref(x, w1, w2)
    assert out.shape == ref.shape and out.dtype == ref.dtype
    # Tolerance covers bf16 MXU operands (f32 accumulation) across both convs.
    assert jnp.allclose(out, ref, atol=3e-2, rtol=3e-2), "mismatch vs reference"

    print("KERNEL_OK")
</pallas_src>

<mosaic_0001>
module attributes {stable_mosaic.version = 11 : i64} {
  func.func @_resblock_kernel(%arg0: i32, %arg1: memref<1x4x326xf32, #tpu.memory_space<vmem>>, %arg2: memref<1x288xi32, #tpu.memory_space<vmem>>, %arg3: memref<9x4x4xbf16, #tpu.memory_space<vmem>>, %arg4: memref<9x4x4xbf16, #tpu.memory_space<vmem>>, %arg5: memref<1x4x288xf32, #tpu.memory_space<vmem>>, %arg6: memref<4x326xbf16, #tpu.memory_space<vmem>>, %arg7: memref<4x326xbf16, #tpu.memory_space<vmem>>) attributes {dimension_semantics = [#tpu.dimension_semantics<parallel>], iteration_bounds = array<i64: 2>, scalar_prefetch = 0 : i64, scratch_operands = 2 : i64, tpu.core_type = #tpu.core_type<tc>, window_params = [{transform_indices = @transform_0, window_bounds = array<i64: 1, 4, 326>}, {pipeline_mode = #tpu.pipeline_mode<synchronous>, transform_indices = @transform_1, window_bounds = array<i64: 1, 288>}, {pipeline_mode = #tpu.pipeline_mode<synchronous>, transform_indices = @transform_2, window_bounds = array<i64: 9, 4, 4>}, {pipeline_mode = #tpu.pipeline_mode<synchronous>, transform_indices = @transform_3, window_bounds = array<i64: 9, 4, 4>}, {transform_indices = @transform_4, window_bounds = array<i64: 1, 4, 288>}]} {
    %c0 = arith.constant 0 : index
    %c0_0 = arith.constant 0 : index
    %0 = vector.load %arg2[%c0, %c0_0] : memref<1x288xi32, #tpu.memory_space<vmem>>, vector<1x288xi32>
    %c16_i32 = arith.constant 16 : i32
    %1 = vector.broadcast %c16_i32 : i32 to vector<1x288xi32>
    %2 = arith.cmpi slt, %0, %1 : vector<1x288xi32>
    %c0_1 = arith.constant 0 : index
    %c0_2 = arith.constant 0 : index
    %c0_3 = arith.constant 0 : index
    %3 = vector.load %arg1[%c0_1, %c0_2, %c0_3] : memref<1x4x326xf32, #tpu.memory_space<vmem>>, vector<1x4x326xf32>
    %4 = vector.shape_cast %3 : vector<1x4x326xf32> to vector<4x326xf32>
    %5 = arith.truncf %4 : vector<4x326xf32> to vector<4x326xbf16>
    %c0_4 = arith.constant 0 : index
    %c0_5 = arith.constant 0 : index
    %6 = vector.load %arg6[%c0_4, %c0_5] : memref<4x326xbf16, #tpu.memory_space<vmem>>, vector<4x326xbf16>
    tpu.vector_store %arg6[%c0_4, %c0_5], %5 {strides = array<i32>} : memref<4x326xbf16, #tpu.memory_space<vmem>>, vector<4x326xbf16>,
    %c0_6 = arith.constant 0 : index
    %c0_7 = arith.constant 0 : index
    %c0_8 = arith.constant 0 : index
    %7 = vector.load %arg3[%c0_6, %c0_7, %c0_8] : memref<9x4x4xbf16, #tpu.memory_space<vmem>>, vector<1x4x4xbf16>
    %8 = vector.shape_cast %7 : vector<1x4x4xbf16> to vector<4x4xbf16>
    %c0_9 = arith.constant 0 : index
    %c0_10 = arith.constant 0 : index
    %9 = vector.load %arg6[%c0_9, %c0_10] : memref<4x326xbf16, #tpu.memory_space<vmem>>, vector<4x288xbf16>
    %cst = arith.constant dense<0.000000e+00> : vector<4x288xf32>
    %10 = tpu.matmul %8, %9, %cst {dimension_numbers = #tpu.dot_dimension_numbers<[1], [0], [0], [1], [0, 0, 1, 1], [], []>} : vector<4x4xbf16>, vector<4x288xbf16>, vector<4x288xf32> -> vector<4x288xf32>
    %c1 = arith.constant 1 : index
    %c0_11 = arith.constant 0 : index
    %c0_12 = arith.constant 0 : index
    %11 = vector.load %arg3[%c1, %c0_11, %c0_12] : memref<9x4x4xbf16, #tpu.memory_space<vmem>>, vector<1x4x4xbf16>
    %12 = vector.shape_cast %11 : vector<1x4x4xbf16> to vector<4x4xbf16>
    %c0_13 = arith.constant 0 : index
    %c1_14 = arith.constant 1 : index
    %13 = vector.load %arg6[%c0_13, %c1_14] : memref<4x326xbf16, #tpu.memory_space<vmem>>, vector<4x288xbf16>
    %cst_15 = arith.constant dense<0.000000e+00> : vector<4x288xf32>
    %14 = tpu.matmul %12, %13, %cst_15 {dimension_numbers = #tpu.dot_dimension_numbers<[1], [0], [0], [1], [0, 0, 1, 1], [], []>} : vector<4x4xbf16>, vector<4x288xbf16>, vector<4x288xf32> -> vector<4x288xf32>
    %c2 = arith.constant 2 : index
    %c0_16 = arith.constant 0 : index
    %c0_17 = arith.constant 0 : index
    %15 = vector.load %arg3[%c2, %c0_16, %c0_17] : memref<9x4x4xbf16, #tpu.memory_space<vmem>>, vector<1x4x4xbf16>
    %16 = vector.shape_cast %15 : vector<1x4x4xbf16> to vector<4x4xbf16>
    %c0_18 = arith.constant 0 : index
    %c2_19 = arith.constant 2 : index
    %17 = vector.load %arg6[%c0_18, %c2_19] : memref<4x326xbf16, #tpu.memory_space<vmem>>, vector<4x288xbf16>
    %cst_20 = arith.constant dense<0.000000e+00> : vector<4x288xf32>
    %18 = tpu.matmul %16, %17, %cst_20 {dimension_numbers = #tpu.dot_dimension_numbers<[1], [0], [0], [1], [0, 0, 1, 1], [], []>} : vector<4x4xbf16>, vector<4x288xbf16>, vector<4x288xf32> -> vector<4x288xf32>
    %c3 = arith.constant 3 : index
    %c0_21 = arith.constant 0 : index
    %c0_22 = arith.constant 0 : index
    %19 = vector.load %arg3[%c3, %c0_21, %c0_22] : memref<9x4x4xbf16, #tpu.memory_space<vmem>>, vector<1x4x4xbf16>
    %20 = vector.shape_cast %19 : vector<1x4x4xbf16> to vector<4x4xbf16>
    %c0_23 = arith.constant 0 : index
    %c18 = arith.constant 18 : index
    %21 = vector.load %arg6[%c0_23, %c18] : memref<4x326xbf16, #tpu.memory_space<vmem>>, vector<4x288xbf16>
    %cst_24 = arith.constant dense<0.000000e+00> : vector<4x288xf32>
    %22 = tpu.matmul %20, %21, %cst_24 {dimension_numbers = #tpu.dot_dimension_numbers<[1], [0], [0], [1], [0, 0, 1, 1], [], []>} : vector<4x4xbf16>, vector<4x288xbf16>, vector<4x288xf32> -> vector<4x288xf32>
    %c4 = arith.constant 4 : index
    %c0_25 = arith.constant 0 : index
    %c0_26 = arith.constant 0 : index
    %23 = vector.load %arg3[%c4, %c0_25, %c0_26] : memref<9x4x4xbf16, #tpu.memory_space<vmem>>, vector<1x4x4xbf16>
    %24 = vector.shape_cast %23 : vector<1x4x4xbf16> to vector<4x4xbf16>
    %c0_27 = arith.constant 0 : index
    %c19 = arith.constant 19 : index
    %25 = vector.load %arg6[%c0_27, %c19] : memref<4x326xbf16, #tpu.memory_space<vmem>>, vector<4x288xbf16>
    %cst_28 = arith.constant dense<0.000000e+00> : vector<4x288xf32>
    %26 = tpu.matmul %24, %25, %cst_28 {dimension_numbers = #tpu.dot_dimension_numbers<[1], [0], [0], [1], [0, 0, 1, 1], [], []>} : vector<4x4xbf16>, vector<4x288xbf16>, vector<4x288xf32> -> vector<4x288xf32>
    %c5 = arith.constant 5 : index
    %c0_29 = arith.constant 0 : index
    %c0_30 = arith.constant 0 : index
    %27 = vector.load %arg3[%c5, %c0_29, %c0_30] : memref<9x4x4xbf16, #tpu.memory_space<vmem>>, vector<1x4x4xbf16>
    %28 = vector.shape_cast %27 : vector<1x4x4xbf16> to vector<4x4xbf16>
    %c0_31 = arith.constant 0 : index
    %c20 = arith.constant 20 : index
    %29 = vector.load %arg6[%c0_31, %c20] : memref<4x326xbf16, #tpu.memory_space<vmem>>, vector<4x288xbf16>
    %cst_32 = arith.constant dense<0.000000e+00> : vector<4x288xf32>
    %30 = tpu.matmul %28, %29, %cst_32 {dimension_numbers = #tpu.dot_dimension_numbers<[1], [0], [0], [1], [0, 0, 1, 1], [], []>} : vector<4x4xbf16>, vector<4x288xbf16>, vector<4x288xf32> -> vector<4x288xf32>
    %c6 = arith.constant 6 : index
    %c0_33 = arith.constant 0 : index
    %c0_34 = arith.constant 0 : index
    %31 = vector.load %arg3[%c6, %c0_33, %c0_34] : memref<9x4x4xbf16, #tpu.memory_space<vmem>>, vector<1x4x4xbf16>
    %32 = vector.shape_cast %31 : vector<1x4x4xbf16> to vector<4x4xbf16>
    %c0_35 = arith.constant 0 : index
    %c36 = arith.constant 36 : index
    %33 = vector.load %arg6[%c0_35, %c36] : memref<4x326xbf16, #tpu.memory_space<vmem>>, vector<4x288xbf16>
    %cst_36 = arith.constant dense<0.000000e+00> : vector<4x288xf32>
    %34 = tpu.matmul %32, %33, %cst_36 {dimension_numbers = #tpu.dot_dimension_numbers<[1], [0], [0], [1], [0, 0, 1, 1], [], []>} : vector<4x4xbf16>, vector<4x288xbf16>, vector<4x288xf32> -> vector<4x288xf32>
    %c7 = arith.constant 7 : index
    %c0_37 = arith.constant 0 : index
    %c0_38 = arith.constant 0 : index
    %35 = vector.load %arg3[%c7, %c0_37, %c0_38] : memref<9x4x4xbf16, #tpu.memory_space<vmem>>, vector<1x4x4xbf16>
    %36 = vector.shape_cast %35 : vector<1x4x4xbf16> to vector<4x4xbf16>
    %c0_39 = arith.constant 0 : index
    %c37 = arith.constant 37 : index
    %37 = vector.load %arg6[%c0_39, %c37] : memref<4x326xbf16, #tpu.memory_space<vmem>>, vector<4x288xbf16>
    %cst_40 = arith.constant dense<0.000000e+00> : vector<4x288xf32>
    %38 = tpu.matmul %36, %37, %cst_40 {dimension_numbers = #tpu.dot_dimension_numbers<[1], [0], [0], [1], [0, 0, 1, 1], [], []>} : vector<4x4xbf16>, vector<4x288xbf16>, vector<4x288xf32> -> vector<4x288xf32>
    %c8 = arith.constant 8 : index
    %c0_41 = arith.constant 0 : index
    %c0_42 = arith.constant 0 : index
    %39 = vector.load %arg3[%c8, %c0_41, %c0_42] : memref<9x4x4xbf16, #tpu.memory_space<vmem>>, vector<1x4x4xbf16>
    %40 = vector.shape_cast %39 : vector<1x4x4xbf16> to vector<4x4xbf16>
    %c0_43 = arith.constant 0 : index
    %c38 = arith.constant 38 : index
    %41 = vector.load %arg6[%c0_43, %c38] : memref<4x326xbf16, #tpu.memory_space<vmem>>, vector<4x288xbf16>
    %cst_44 = arith.constant dense<0.000000e+00> : vector<4x288xf32>
    %42 = tpu.matmul %40, %41, %cst_44 {dimension_numbers = #tpu.dot_dimension_numbers<[1], [0], [0], [1], [0, 0, 1, 1], [], []>} : vector<4x4xbf16>, vector<4x288xbf16>, vector<4x288xf32> -> vector<4x288xf32>
    %43 = arith.addf %10, %14 : vector<4x288xf32>
    %44 = arith.addf %18, %22 : vector<4x288xf32>
    %45 = arith.addf %26, %30 : vector<4x288xf32>
    %46 = arith.addf %34, %38 : vector<4x288xf32>
    %47 = arith.addf %43, %44 : vector<4x288xf32>
    %48 = arith.addf %45, %46 : vector<4x288xf32>
    %49 = arith.addf %47, %48 : vector<4x288xf32>
    %50 = arith.addf %49, %42 : vector<4x288xf32>
    %cst_45 = arith.constant 0.000000e+00 : f32
    %51 = vector.shape_cast %2 : vector<1x288xi1> to vector<1x288xi1>
    %52 = vector.broadcast %51 : vector<1x288xi1> to vector<4x288xi1>
    %53 = vector.broadcast %cst_45 : f32 to vector<4x288xf32>
    %54 = arith.select %52, %50, %53 : vector<4x288xi1>, vector<4x288xf32>
    %cst_46 = arith.constant dense<0.000000e+00> : vector<4xf32>
    %55 = vector.multi_reduction <add>, %54, %cst_46 [1] : vector<4x288xf32> to vector<4xf32>
    %56 = vector.shape_cast %55 : vector<4xf32> to vector<4x1xf32>
    %57 = arith.mulf %54, %54 : vector<4x288xf32>
    %cst_47 = arith.constant dense<0.000000e+00> : vector<4xf32>
    %58 = vector.multi_reduction <add>, %57, %cst_47 [1] : vector<4x288xf32> to vector<4xf32>
    %59 = vector.shape_cast %58 : vector<4xf32> to vector<4x1xf32>
    %cst_48 = arith.constant 3.906250e-03 : f32
    %60 = vector.broadcast %cst_48 : f32 to vector<4x1xf32>
    %61 = arith.mulf %56, %60 : vector<4x1xf32>
    %cst_49 = arith.constant 3.906250e-03 : f32
    %62 = vector.broadcast %cst_49 : f32 to vector<4x1xf32>
    %63 = arith.mulf %59, %62 : vector<4x1xf32>
    %64 = arith.mulf %61, %61 : vector<4x1xf32>
    %65 = arith.subf %63, %64 : vector<4x1xf32>
    %cst_50 = arith.constant 0.000000e+00 : f32
    %66 = vector.broadcast %cst_50 : f32 to vector<4x1xf32>
    %67 = arith.maximumf %65, %66 : vector<4x1xf32>
    %68 = vector.broadcast %61 : vector<4x1xf32> to vector<4x288xf32>
    %69 = arith.subf %50, %68 : vector<4x288xf32>
    %cst_51 = arith.constant 9.99999974E-6 : f32
    %70 = vector.broadcast %cst_51 : f32 to vector<4x1xf32>
    %71 = arith.addf %67, %70 : vector<4x1xf32>
    %72 = math.rsqrt %71 : vector<4x1xf32>
    %73 = vector.broadcast %72 : vector<4x1xf32> to vector<4x288xf32>
    %74 = arith.mulf %69, %73 : vector<4x288xf32>
    %cst_52 = arith.constant 0.000000e+00 : f32
    %75 = vector.broadcast %cst_52 : f32 to vector<4x288xf32>
    %76 = arith.cmpf oge, %74, %75 : vector<4x288xf32>
    %cst_53 = arith.constant 2.000000e-01 : f32
    %77 = vector.broadcast %cst_53 : f32 to vector<4x288xf32>
    %78 = arith.mulf %77, %74 : vector<4x288xf32>
    %79 = arith.select %76, %74, %78 : vector<4x288xi1>, vector<4x288xf32>
    %c16_i32_54 = arith.constant 16 : i32
    %80 = vector.broadcast %c16_i32_54 : i32 to vector<1x288xi32>
    %81 = arith.cmpi eq, %0, %80 : vector<1x288xi32>
    %82 = vector.extract_strided_slice %79 {offsets = [0, 286], sizes = [4, 2], strides = [1, 1]} : vector<4x288xf32> to vector<4x2xf32>
    %83 = vector.extract_strided_slice %79 {offsets = [0, 0], sizes = [4, 286], strides = [1, 1]} : vector<4x288xf32> to vector<4x286xf32>
    %84 = tpu.concatenate %82, %83 in 1 : vector<4x2xf32>, vector<4x286xf32> -> vector<4x288xf32>
    %c17_i32 = arith.constant 17 : i32
    %85 = vector.broadcast %c17_i32 : i32 to vector<1x288xi32>
    %86 = arith.cmpi eq, %0, %85 : vector<1x288xi32>
    %87 = vector.extract_strided_slice %79 {offsets = [0, 2], sizes = [4, 286], strides = [1, 1]} : vector<4x288xf32> to vector<4x286xf32>
    %88 = vector.extract_strided_slice %79 {offsets = [0, 0], sizes = [4, 2], strides = [1, 1]} : vector<4x288xf32> to vector<4x2xf32>
    %89 = tpu.concatenate %87, %88 in 1 : vector<4x286xf32>, vector<4x2xf32> -> vector<4x288xf32>
    %90 = vector.shape_cast %86 : vector<1x288xi1> to vector<1x288xi1>
    %91 = vector.broadcast %90 : vector<1x288xi1> to vector<4x288xi1>
    %92 = arith.select %91, %89, %79 : vector<4x288xi1>, vector<4x288xf32>
    %93 = vector.shape_cast %81 : vector<1x288xi1> to vector<1x288xi1>
    %94 = vector.broadcast %93 : vector<1x288xi1> to vector<4x288xi1>
    %95 = arith.select %94, %84, %92 : vector<4x288xi1>, vector<4x288xf32>
    %cst_55 = arith.constant 0.000000e+00 : bf16
    %96 = vector.broadcast %cst_55 : bf16 to vector<4x2xbf16>
    %c0_56 = arith.constant 0 : index
    %c324 = arith.constant 324 : index
    %97 = vector.load %arg7[%c0_56, %c324] : memref<4x326xbf16, #tpu.memory_space<vmem>>, vector<4x2xbf16>
    tpu.vector_store %arg7[%c0_56, %c324], %96 {strides = array<i32>} : memref<4x326xbf16, #tpu.memory_space<vmem>>, vector<4x2xbf16>,
    %98 = arith.truncf %95 : vector<4x288xf32> to vector<4x288xbf16>
    %c0_57 = arith.constant 0 : index
    %c19_58 = arith.constant 19 : index
    %99 = vector.load %arg7[%c0_57, %c19_58] : memref<4x326xbf16, #tpu.memory_space<vmem>>, vector<4x288xbf16>
    tpu.vector_store %arg7[%c0_57, %c19_58], %98 {strides = array<i32>} : memref<4x326xbf16, #tpu.memory_space<vmem>>, vector<4x288xbf16>,
    %100 = vector.extract_strided_slice %79 {offsets = [0, 1], sizes = [4, 1], strides = [1, 1]} : vector<4x288xf32> to vector<4x1xf32>
    %101 = arith.truncf %100 : vector<4x1xf32> to vector<4x1xbf16>
    %c0_59 = arith.constant 0 : index
    %c18_60 = arith.constant 18 : index
    %102 = vector.load %arg7[%c0_59, %c18_60] : memref<4x326xbf16, #tpu.memory_space<vmem>>, vector<4x1xbf16>
    tpu.vector_store %arg7[%c0_59, %c18_60], %101 {strides = array<i32>} : memref<4x326xbf16, #tpu.memory_space<vmem>>, vector<4x1xbf16>,
    %c0_61 = arith.constant 0 : index
    %c36_62 = arith.constant 36 : index
    %103 = vector.load %arg7[%c0_61, %c36_62] : memref<4x326xbf16, #tpu.memory_space<vmem>>, vector<4x18xbf16>
    %c0_63 = arith.constant 0 : index
    %c0_64 = arith.constant 0 : index
    %104 = vector.load %arg7[%c0_63, %c0_64] : memref<4x326xbf16, #tpu.memory_space<vmem>>, vector<4x18xbf16>
    tpu.vector_store %arg7[%c0_63, %c0_64], %103 {strides = array<i32>} : memref<4x326xbf16, #tpu.memory_space<vmem>>, vector<4x18xbf16>,
    %c0_65 = arith.constant 0 : index
    %c270 = arith.constant 270 : index
    %105 = vector.load %arg7[%c0_65, %c270] : memref<4x326xbf16, #tpu.memory_space<vmem>>, vector<4x18xbf16>
    %c0_66 = arith.constant 0 : index
    %c306 = arith.constant 306 : index
    %106 = vector.load %arg7[%c0_66, %c306] : memref<4x326xbf16, #tpu.memory_space<vmem>>, vector<4x18xbf16>
    tpu.vector_store %arg7[%c0_66, %c306], %105 {strides = array<i32>} : memref<4x326xbf16, #tpu.memory_space<vmem>>, vector<4x18xbf16>,
    %c0_67 = arith.constant 0 : index
    %c0_68 = arith.constant 0 : index
    %c0_69 = arith.constant 0 : index
    %107 = vector.load %arg4[%c0_67, %c0_68, %c0_69] : memref<9x4x4xbf16, #tpu.memory_space<vmem>>, vector<1x4x4xbf16>
    %108 = vector.shape_cast %107 : vector<1x4x4xbf16> to vector<4x4xbf16>
    %c0_70 = arith.constant 0 : index
    %c0_71 = arith.constant 0 : index
    %109 = vector.load %arg7[%c0_70, %c0_71] : memref<4x326xbf16, #tpu.memory_space<vmem>>, vector<4x288xbf16>
    %cst_72 = arith.constant dense<0.000000e+00> : vector<4x288xf32>
    %110 = tpu.matmul %108, %109, %cst_72 {dimension_numbers = #tpu.dot_dimension_numbers<[1], [0], [0], [1], [0, 0, 1, 1], [], []>} : vector<4x4xbf16>, vector<4x288xbf16>, vector<4x288xf32> -> vector<4x288xf32>
    %c1_73 = arith.constant 1 : index
    %c0_74 = arith.constant 0 : index
    %c0_75 = arith.constant 0 : index
    %111 = vector.load %arg4[%c1_73, %c0_74, %c0_75] : memref<9x4x4xbf16, #tpu.memory_space<vmem>>, vector<1x4x4xbf16>
    %112 = vector.shape_cast %111 : vector<1x4x4xbf16> to vector<4x4xbf16>
    %c0_76 = arith.constant 0 : index
    %c1_77 = arith.constant 1 : index
    %113 = vector.load %arg7[%c0_76, %c1_77] : memref<4x326xbf16, #tpu.memory_space<vmem>>, vector<4x288xbf16>
    %cst_78 = arith.constant dense<0.000000e+00> : vector<4x288xf32>
    %114 = tpu.matmul %112, %113, %cst_78 {dimension_numbers = #tpu.dot_dimension_numbers<[1], [0], [0], [1], [0, 0, 1, 1], [], []>} : vector<4x4xbf16>, vector<4x288xbf16>, vector<4x288xf32> -> vector<4x288xf32>
    %c2_79 = arith.constant 2 : index
    %c0_80 = arith.constant 0 : index
    %c0_81 = arith.constant 0 : index
    %115 = vector.load %arg4[%c2_79, %c0_80, %c0_81] : memref<9x4x4xbf16, #tpu.memory_space<vmem>>, vector<1x4x4xbf16>
    %116 = vector.shape_cast %115 : vector<1x4x4xbf16> to vector<4x4xbf16>
    %c0_82 = arith.constant 0 : index
    %c2_83 = arith.constant 2 : index
    %117 = vector.load %arg7[%c0_82, %c2_83] : memref<4x326xbf16, #tpu.memory_space<vmem>>, vector<4x288xbf16>
    %cst_84 = arith.constant dense<0.000000e+00> : vector<4x288xf32>
    %118 = tpu.matmul %116, %117, %cst_84 {dimension_numbers = #tpu.dot_dimension_numbers<[1], [0], [0], [1], [0, 0, 1, 1], [], []>} : vector<4x4xbf16>, vector<4x288xbf16>, vector<4x288xf32> -> vector<4x288xf32>
    %c3_85 = arith.constant 3 : index
    %c0_86 = arith.constant 0 : index
    %c0_87 = arith.constant 0 : index
    %119 = vector.load %arg4[%c3_85, %c0_86, %c0_87] : memref<9x4x4xbf16, #tpu.memory_space<vmem>>, vector<1x4x4xbf16>
    %120 = vector.shape_cast %119 : vector<1x4x4xbf16> to vector<4x4xbf16>
    %c0_88 = arith.constant 0 : index
    %c18_89 = arith.constant 18 : index
    %121 = vector.load %arg7[%c0_88, %c18_89] : memref<4x326xbf16, #tpu.memory_space<vmem>>, vector<4x288xbf16>
    %cst_90 = arith.constant dense<0.000000e+00> : vector<4x288xf32>
    %122 = tpu.matmul %120, %121, %cst_90 {dimension_numbers = #tpu.dot_dimension_numbers<[1], [0], [0], [1], [0, 0, 1, 1], [], []>} : vector<4x4xbf16>, vector<4x288xbf16>, vector<4x288xf32> -> vector<4x288xf32>
    %c4_91 = arith.constant 4 : index
    %c0_92 = arith.constant 0 : index
    %c0_93 = arith.constant 0 : index
    %123 = vector.load %arg4[%c4_91, %c0_92, %c0_93] : memref<9x4x4xbf16, #tpu.memory_space<vmem>>, vector<1x4x4xbf16>
    %124 = vector.shape_cast %123 : vector<1x4x4xbf16> to vector<4x4xbf16>
    %c0_94 = arith.constant 0 : index
    %c19_95 = arith.constant 19 : index
    %125 = vector.load %arg7[%c0_94, %c19_95] : memref<4x326xbf16, #tpu.memory_space<vmem>>, vector<4x288xbf16>
    %cst_96 = arith.constant dense<0.000000e+00> : vector<4x288xf32>
    %126 = tpu.matmul %124, %125, %cst_96 {dimension_numbers = #tpu.dot_dimension_numbers<[1], [0], [0], [1], [0, 0, 1, 1], [], []>} : vector<4x4xbf16>, vector<4x288xbf16>, vector<4x288xf32> -> vector<4x288xf32>
    %c5_97 = arith.constant 5 : index
    %c0_98 = arith.constant 0 : index
    %c0_99 = arith.constant 0 : index
    %127 = vector.load %arg4[%c5_97, %c0_98, %c0_99] : memref<9x4x4xbf16, #tpu.memory_space<vmem>>, vector<1x4x4xbf16>
    %128 = vector.shape_cast %127 : vector<1x4x4xbf16> to vector<4x4xbf16>
    %c0_100 = arith.constant 0 : index
    %c20_101 = arith.constant 20 : index
    %129 = vector.load %arg7[%c0_100, %c20_101] : memref<4x326xbf16, #tpu.memory_space<vmem>>, vector<4x288xbf16>
    %cst_102 = arith.constant dense<0.000000e+00> : vector<4x288xf32>
    %130 = tpu.matmul %128, %129, %cst_102 {dimension_numbers = #tpu.dot_dimension_numbers<[1], [0], [0], [1], [0, 0, 1, 1], [], []>} : vector<4x4xbf16>, vector<4x288xbf16>, vector<4x288xf32> -> vector<4x288xf32>
    %c6_103 = arith.constant 6 : index
    %c0_104 = arith.constant 0 : index
    %c0_105 = arith.constant 0 : index
    %131 = vector.load %arg4[%c6_103, %c0_104, %c0_105] : memref<9x4x4xbf16, #tpu.memory_space<vmem>>, vector<1x4x4xbf16>
    %132 = vector.shape_cast %131 : vector<1x4x4xbf16> to vector<4x4xbf16>
    %c0_106 = arith.constant 0 : index
    %c36_107 = arith.constant 36 : index
    %133 = vector.load %arg7[%c0_106, %c36_107] : memref<4x326xbf16, #tpu.memory_space<vmem>>, vector<4x288xbf16>
    %cst_108 = arith.constant dense<0.000000e+00> : vector<4x288xf32>
    %134 = tpu.matmul %132, %133, %cst_108 {dimension_numbers = #tpu.dot_dimension_numbers<[1], [0], [0], [1], [0, 0, 1, 1], [], []>} : vector<4x4xbf16>, vector<4x288xbf16>, vector<4x288xf32> -> vector<4x288xf32>
    %c7_109 = arith.constant 7 : index
    %c0_110 = arith.constant 0 : index
    %c0_111 = arith.constant 0 : index
    %135 = vector.load %arg4[%c7_109, %c0_110, %c0_111] : memref<9x4x4xbf16, #tpu.memory_space<vmem>>, vector<1x4x4xbf16>
    %136 = vector.shape_cast %135 : vector<1x4x4xbf16> to vector<4x4xbf16>
    %c0_112 = arith.constant 0 : index
    %c37_113 = arith.constant 37 : index
    %137 = vector.load %arg7[%c0_112, %c37_113] : memref<4x326xbf16, #tpu.memory_space<vmem>>, vector<4x288xbf16>
    %cst_114 = arith.constant dense<0.000000e+00> : vector<4x288xf32>
    %138 = tpu.matmul %136, %137, %cst_114 {dimension_numbers = #tpu.dot_dimension_numbers<[1], [0], [0], [1], [0, 0, 1, 1], [], []>} : vector<4x4xbf16>, vector<4x288xbf16>, vector<4x288xf32> -> vector<4x288xf32>
    %c8_115 = arith.constant 8 : index
    %c0_116 = arith.constant 0 : index
    %c0_117 = arith.constant 0 : index
    %139 = vector.load %arg4[%c8_115, %c0_116, %c0_117] : memref<9x4x4xbf16, #tpu.memory_space<vmem>>, vector<1x4x4xbf16>
    %140 = vector.shape_cast %139 : vector<1x4x4xbf16> to vector<4x4xbf16>
    %c0_118 = arith.constant 0 : index
    %c38_119 = arith.constant 38 : index
    %141 = vector.load %arg7[%c0_118, %c38_119] : memref<4x326xbf16, #tpu.memory_space<vmem>>, vector<4x288xbf16>
    %cst_120 = arith.constant dense<0.000000e+00> : vector<4x288xf32>
    %142 = tpu.matmul %140, %141, %cst_120 {dimension_numbers = #tpu.dot_dimension_numbers<[1], [0], [0], [1], [0, 0, 1, 1], [], []>} : vector<4x4xbf16>, vector<4x288xbf16>, vector<4x288xf32> -> vector<4x288xf32>
    %143 = arith.addf %110, %114 : vector<4x288xf32>
    %144 = arith.addf %118, %122 : vector<4x288xf32>
    %145 = arith.addf %126, %130 : vector<4x288xf32>
    %146 = arith.addf %134, %138 : vector<4x288xf32>
    %147 = arith.addf %143, %144 : vector<4x288xf32>
    %148 = arith.addf %145, %146 : vector<4x288xf32>
    %149 = arith.addf %147, %148 : vector<4x288xf32>
    %150 = arith.addf %149, %142 : vector<4x288xf32>
    %cst_121 = arith.constant 0.000000e+00 : f32
    %151 = vector.shape_cast %2 : vector<1x288xi1> to vector<1x288xi1>
    %152 = vector.broadcast %151 : vector<1x288xi1> to vector<4x288xi1>
    %153 = vector.broadcast %cst_121 : f32 to vector<4x288xf32>
    %154 = arith.select %152, %150, %153 : vector<4x288xi1>, vector<4x288xf32>
    %cst_122 = arith.constant dense<0.000000e+00> : vector<4xf32>
    %155 = vector.multi_reduction <add>, %154, %cst_122 [1] : vector<4x288xf32> to vector<4xf32>
    %156 = vector.shape_cast %155 : vector<4xf32> to vector<4x1xf32>
    %157 = arith.mulf %154, %154 : vector<4x288xf32>
    %cst_123 = arith.constant dense<0.000000e+00> : vector<4xf32>
    %158 = vector.multi_reduction <add>, %157, %cst_123 [1] : vector<4x288xf32> to vector<4xf32>
    %159 = vector.shape_cast %158 : vector<4xf32> to vector<4x1xf32>
    %cst_124 = arith.constant 3.906250e-03 : f32
    %160 = vector.broadcast %cst_124 : f32 to vector<4x1xf32>
    %161 = arith.mulf %156, %160 : vector<4x1xf32>
    %cst_125 = arith.constant 3.906250e-03 : f32
    %162 = vector.broadcast %cst_125 : f32 to vector<4x1xf32>
    %163 = arith.mulf %159, %162 : vector<4x1xf32>
    %164 = arith.mulf %161, %161 : vector<4x1xf32>
    %165 = arith.subf %163, %164 : vector<4x1xf32>
    %cst_126 = arith.constant 0.000000e+00 : f32
    %166 = vector.broadcast %cst_126 : f32 to vector<4x1xf32>
    %167 = arith.maximumf %165, %166 : vector<4x1xf32>
    %168 = vector.broadcast %161 : vector<4x1xf32> to vector<4x288xf32>
    %169 = arith.subf %150, %168 : vector<4x288xf32>
    %cst_127 = arith.constant 9.99999974E-6 : f32
    %170 = vector.broadcast %cst_127 : f32 to vector<4x1xf32>
    %171 = arith.addf %167, %170 : vector<4x1xf32>
    %172 = math.rsqrt %171 : vector<4x1xf32>
    %173 = vector.broadcast %172 : vector<4x1xf32> to vector<4x288xf32>
    %174 = arith.mulf %169, %173 : vector<4x288xf32>
    %c0_128 = arith.constant 0 : index
    %c0_129 = arith.constant 0 : index
    %c19_130 = arith.constant 19 : index
    %175 = vector.load %arg1[%c0_128, %c0_129, %c19_130] : memref<1x4x326xf32, #tpu.memory_space<vmem>>, vector<1x4x288xf32>
    %176 = vector.shape_cast %175 : vector<1x4x288xf32> to vector<4x288xf32>
    %177 = arith.addf %174, %176 : vector<4x288xf32>
    %c0_131 = arith.constant 0 : index
    %c0_132 = arith.constant 0 : index
    %c0_133 = arith.constant 0 : index
    %178 = vector.load %arg5[%c0_131, %c0_132, %c0_133] : memref<1x4x288xf32, #tpu.memory_space<vmem>>, vector<1x4x288xf32>
    %179 = vector.shape_cast %178 : vector<1x4x288xf32> to vector<4x288xf32>
    %180 = vector.shape_cast %177 : vector<4x288xf32> to vector<1x4x288xf32>
    tpu.vector_store %arg5[%c0_131, %c0_132, %c0_133], %180 {strides = array<i32>} : memref<1x4x288xf32, #tpu.memory_space<vmem>>, vector<1x4x288xf32>,
    return
  }
  func.func @transform_0(%arg0: i32) -> (i32, i32, i32) {
    %c0_i32 = arith.constant 0 : i32
    %c0_i32_0 = arith.constant 0 : i32
    %c0_i32_1 = arith.constant 0 : i32
    return %arg0, %c0_i32, %c0_i32_0 : i32, i32, i32
  }
  func.func @transform_1(%arg0: i32) -> (i32, i32) {
    %c0_i32 = arith.constant 0 : i32
    %c0_i32_0 = arith.constant 0 : i32
    %c0_i32_1 = arith.constant 0 : i32
    return %c0_i32, %c0_i32_0 : i32, i32
  }
  func.func @transform_2(%arg0: i32) -> (i32, i32, i32) {
    %c0_i32 = arith.constant 0 : i32
    %c0_i32_0 = arith.constant 0 : i32
    %c0_i32_1 = arith.constant 0 : i32
    %c0_i32_2 = arith.constant 0 : i32
    return %c0_i32, %c0_i32_0, %c0_i32_1 : i32, i32, i32
  }
  func.func @transform_3(%arg0: i32) -> (i32, i32, i32) {
    %c0_i32 = arith.constant 0 : i32
    %c0_i32_0 = arith.constant 0 : i32
    %c0_i32_1 = arith.constant 0 : i32
    %c0_i32_2 = arith.constant 0 : i32
    return %c0_i32, %c0_i32_0, %c0_i32_1 : i32, i32, i32
  }
  func.func @transform_4(%arg0: i32) -> (i32, i32, i32) {
    %c0_i32 = arith.constant 0 : i32
    %c0_i32_0 = arith.constant 0 : i32
    %c0_i32_1 = arith.constant 0 : i32
    return %arg0, %c0_i32, %c0_i32_0 : i32, i32, i32
  }
}

</mosaic_0001>

<bundles_post_ra>
// kernel: tpu_custom_call.1
= control target key start
LH: loop header
LB: loop body
LE: loop exit
PB: predicated region body
PF: predicated region fallthrough
CT: control target
= control target key end

     0   :  { %9 = vsyncpa [#allocation5], 0  ;;  %s2502_s0 = inlined_call_operand.vmem [shape: f32[2,4,326], index: 0, kind: input, shape index: {}]   ;;  %s2503_s1 = inlined_call_operand.vmem [shape: s32[1,288], index: 1, kind: input, shape index: {}]   ;;  %s2504_s2 = inlined_call_operand.vmem [shape: bf16[9,4,4], index: 2, kind: input, shape index: {}]   ;;  %s2505_s3 = inlined_call_operand.vmem [shape: bf16[9,4,4], index: 3, kind: input, shape index: {}]   ;;  %s2506_s4 = inlined_call_operand.hbm [shape: f32[2,4,288], index: 4, kind: output, shape index: {}]  }
   0x1   :  { %11 = vsyncpa [#allocation5 + $0x1], 0  ;;  %s2056_s15 = smov 0   ;;  %s2058_s16 = smov 0  }
   0x2   :  { %s2060_s17 = smov 0   ;;  %s2062_s18 = smov 0  }
   0x3 LB: > { %s2077_s19 = sadd.s32 4294967295, %s2014_s18   ;;  %s1803_s20 = sadd.s32 4294967294, %s2014_s18   ;;  %s2014_s18 = sphi %s2062_s18, %s2576_s18   ;;  %s2010_s17 = sphi %s2060_s17, %s2575_s17   ;;  %s2006_s16 = sphi %s2058_s16, %s2574_s16   ;;  %s2002_s15 = sphi %s2056_s15, %s2573_s15  }
   0x4   : > { %s2081_s21 = sadd.s32 1, %s2014_s18   ;;  %s113_s22 = sadd.s32 1, %s2010_s17 }
   0x5   : > { %s110_s23 = ssub.s32 %s2014_s18, %s2081_s21  ;;  %p123_p0 = scmp.ne.s32.totalorder %s2010_s17, %s2006_s16 }
   0x6   : > { %p111_p1 = scmp.eq.s32.totalorder %s110_s23, 0  ;;  %p124_p2 = scmp.eq.s32.totalorder %s2077_s19, 1 }
   0x7   : > { %p129_p3 = scmp.ne.s32.totalorder %s2006_s16, %s2002_s15  ;;  %p130_p4 = scmp.eq.s32.totalorder %s1803_s20, 1 }
   0x8   : > { %s2092_s24 = scalar_select %p111_p1, %s2010_s17, %s113_s22  }
   0x9   : > { %p2094_p5 = por %p124_p2, %p123_p0  ;;  %p2098_p6 = por %p130_p4, %p129_p3 }
   0xa   : > { %p1806_p7 = scmp.ge.s32.totalorder %s2014_s18, 1  ;;  %p165_p8 = scmp.lt.s32.totalorder %s2014_s18, 3 }
   0xc   : > { %p166_p9 = pnand %p1806_p7, %p165_p8 }
   0xd   : > { %p191_p10 = scmp.lt.s32.totalorder (!%p166_p9), %s2077_s19, 1  ;;  %s2016_s6 = smov (!%p166_p9), 127  }
   0xe   : > { %169 = sbr.rel (%p166_p9) target bundleno = 1469 (0x5bd), region = 36  ;;  %s2017_s7 = smov (!%p166_p9), 110  }
   0xf   : > { %s2018_s8 = smov (!%p166_p9), 108   ;;  %s2019_s9 = smov (!%p166_p9), 91  }
  0x10   : > { %s2020_s10 = smov (!%p166_p9), 90   ;;  %s2021_s11 = smov (!%p166_p9), 126  }
  0x11   : > { %s2022_s12 = smov (!%p166_p9), 109   ;;  %s2023_s13 = smov (!%p166_p9), 92  }
  0x12   : > { %s2027_s29 = smov (!%p166_p9), 98   ;;  %s2028_s30 = smov (!%p166_p9), 2  }
  0x13   : > { %s192_s27 = scalar_select %p191_p10, %s2077_s19, 1  ;;  %vm219_vm0 = vcmask 1041408   ;;  %vm230_vm1 = vcmask 1043458   ;;  %vm232_vm3 = vcmask 570372   ;;  %vm223_vm4 = vcmask 1045508  }
  0x14   : > { %vm231_vm2 = vmor %vm230_vm1, %vm219_vm0  ;;  %vm227_vm5 = vcmask 1043456   ;;  %vm253_vm7 = vcmask 1039360   ;;  %v1808_v51 = vld [vmem:[%s2504_s2 + $0x2] sm:$0x3]  ;;  %vm2515_vm8 = vcmask 31744   ;;  %vm2513_vm9 = vcmask 900096  }
  0x15   : > { %s1882_s28 = smul.u32 12, %s192_s27  ;;  %vm233_vm6 = vmor %vm232_vm3, %vm231_vm2  ;;  %v1813_v59 = vld [vmem:[%s2504_s2 + $0x6] sm:$0x3]  ;;  %vm2512_vm10 = vcmask 883712   ;;  %vm2511_vm11 = vcmask 744448   ;;  %vm2510_vm12 = vcmask 736256  }
  0x16   : > { %vm2514_vm13 = vcmask 1031168   ;;  %vm2508_vm14 = vcmask 891904   ;;  %vm2507_vm15 = vcmask 752640   ;;  %s2025_s27 = smov 17   ;;  %s2029_s14 = smov 19  }
  0x17   : > { %s2109_s5 = scalar_lea.vmem %s2502_s0, %s1882_s28  ;;  %s2026_s28 = smov 30  }
  0x18   : > { %v2112_v0 = vld [vmem:[%s2109_s5] sm:$0xff]  ;;  %v200_v1 = vld [vmem:[%s2109_s5 + $0x8] sm:$0xf]  ;;  %s2030_s20 = smov 36  }
  0x19   : > { %203 = vst [vmem:[#allocation1] ss:$2 sm:$0xff] %v2112_v0 }
  0x1a   : > { %205 = vst [vmem:[#allocation1 + $0x10] ss:$2 sm:$0xff] %v200_v1 }
  0x20   : > { %v206_v2 = vld.sshfl [vmem:[#allocation1] sm:$0xff pattern:$0x75316420]  ;;  %v207_v3 = vld.sshfl [vmem:[#allocation1 + $0x8] sm:$0xff pattern:$0x75316420] }
  0x21   : > { %v208_v4 = vld.sshfl [vmem:[#allocation1 + $0x10] sm:$0xff pattern:$0x75316420]  ;;  %v212_v5 = vpack.c.bf16 %v207_v3, %v206_v2 }
  0x22   : > { %v213_v6 = vpack.c.bf16 %v208_v4, %v208_v4 }
  0x23   : > { %v216_v7 = vrot.slane %v212_v5, 2 }
  0x24   : > { %v217_v8 = vrot.slane %v213_v6, 4  ;;  %v218_v9 = vrot.slane %v213_v6, 6 }
  0x25   : > { %v222_v10 = vsel %vm219_vm0, %v212_v5, %v216_v7 }
  0x26   : > { %v226_v11 = vsel %vm223_vm4, %v217_v8, %v218_v9  ;;  %v1818_v8 = vld [vmem:[%s2504_s2 + $0xa] sm:$0x3] }
  0x27   : > { %v228_v12 = vsel %vm227_vm5, %v222_v10, %v226_v11 }
  0x28   : > { %234 = vst.msk [vmem:[#allocation2] sm:$0x3f] %vm233_vm6, %v228_v12 }
  0x2f   : > { %v236_v13 = vld [vmem:[#allocation2] sm:$0x3f] }
  0x30   : > { %240 = vst [vmem:[#allocation1] ss:$4 sm:$0xff] %v236_v13  ;;  %v310_v14 = vld [vmem:[#allocation2] sm:$0x3f] }
  0x31   : > { %v383_v18 = vld [vmem:[#allocation2] sm:$0x3f] }
  0x32   : > { %v456_v22 = vld [vmem:[#allocation2] sm:$0x3f] }
  0x33   : > { %v529_v26 = vld [vmem:[#allocation2] sm:$0x3f] }
  0x37   : > { %v245_v15 = vld.sshfl [vmem:[#allocation1 + $0x10] sm:$0xff pattern:$0x73625140]  ;;  %v243_v16 = vld.sshfl [vmem:[#allocation1 + $0x8] sm:$0xff pattern:$0x73625140] }
  0x38   : > { %251 = vrot.lane.b32.xlu0 %v245_v15, %s2016_s6  ;;  %249 = vrot.lane.b32.xlu1 %v243_v16, %s2016_s6  ;;  %v241_v17 = vld.sshfl [vmem:[#allocation1] sm:$0xff pattern:$0x73625140] }
  0x39   : > { %314 = vst [vmem:[#allocation1] ss:$4 sm:$0xff] %v310_v14 }
  0x40   : > { %247 = vrot.lane.b32.xlu0 %v241_v17, %s2016_s6  ;;  %v315_v19 = vld.sshfl [vmem:[#allocation1] sm:$0xff pattern:$0x73625140]  ;;  %v317_v20 = vld.sshfl [vmem:[#allocation1 + $0x8] sm:$0xff pattern:$0x73625140] }
  0x41   : > { %321 = vrot.lane.b32.xlu1 %v315_v19, %s2017_s7  ;;  %v319_v21 = vld.sshfl [vmem:[#allocation1 + $0x10] sm:$0xff pattern:$0x73625140]  ;;  %323 = vrot.lane.b32.xlu2 %v317_v20, %s2017_s7  ;;  %v1823_v19 = vld [vmem:[%s2504_s2 + $0xe] sm:$0x3] }
  0x42   : > { %387 = vst [vmem:[#allocation1] ss:$4 sm:$0xff] %v383_v18 }
  0x49   : > { %325 = vrot.lane.b32.xlu1 %v319_v21, %s2017_s7  ;;  %v390_v23 = vld.sshfl [vmem:[#allocation1 + $0x8] sm:$0xff pattern:$0x73625140]  ;;  %v392_v24 = vld.sshfl [vmem:[#allocation1 + $0x10] sm:$0xff pattern:$0x73625140] }
  0x4a   : > { %396 = vrot.lane.b32.xlu0 %v390_v23, %s2018_s8  ;;  %v388_v25 = vld.sshfl [vmem:[#allocation1] sm:$0xff pattern:$0x73625140] }
  0x4b   : > { %460 = vst [vmem:[#allocation1] ss:$4 sm:$0xff] %v456_v22  ;;  %394 = vrot.lane.b32.xlu2 %v388_v25, %s2018_s8 }
  0x52   : > { %v465_v27 = vld.sshfl [vmem:[#allocation1 + $0x10] sm:$0xff pattern:$0x73625140]  ;;  %v461_v28 = vld.sshfl [vmem:[#allocation1] sm:$0xff pattern:$0x73625140] }
  0x53   : > { %471 = vrot.lane.b32.xlu1 %v465_v27, %s2019_s9  ;;  %v463_v29 = vld.sshfl [vmem:[#allocation1 + $0x8] sm:$0xff pattern:$0x73625140]  ;;  %398 = vrot.lane.b32.xlu2 %v392_v24, %s2018_s8 }
  0x54   : > { %469 = vrot.lane.b32.xlu0 %v463_v29, %s2019_s9  ;;  %531 = vst [vmem:[#allocation1] ss:$4 sm:$0xff] %v529_v26  ;;  %v1827_v29 = vld [vmem:[%s2504_s2 + $0x10] sm:$0x3] }
  0x5b   : > { %v536_v30 = vld.sshfl [vmem:[#allocation1 + $0x10] sm:$0xff pattern:$0x73625140]  ;;  %v534_v31 = vld.sshfl [vmem:[#allocation1 + $0x8] sm:$0xff pattern:$0x73625140]  ;;  %467 = vrot.lane.b32.xlu2 %v461_v28, %s2019_s9 }
  0x5c   : > { %542 = vrot.lane.b32.xlu0 %v536_v30, %s2020_s10  ;;  %v532_v32 = vld.sshfl [vmem:[#allocation1] sm:$0xff pattern:$0x73625140] }
  0x5d   : > { %538 = vrot.lane.b32.xlu1 %v532_v32, %s2020_s10  ;;  %598 = vst [vmem:[#allocation1] ss:$4 sm:$0xff] %v236_v13 }
  0x63   : > { %540 = vrot.lane.b32.xlu2 %v534_v31, %s2020_s10 }
  0x64   : > { %v2136_v33 = vld.sshfl [vmem:[#allocation1] sm:$0xff pattern:$0x73625140]  ;;  %v2138_v34 = vld.sshfl [vmem:[#allocation1 + $0x8] sm:$0xff pattern:$0x73625140] }
  0x65   : > { %v2140_v35 = vld.sshfl [vmem:[#allocation1 + $0x10] sm:$0xff pattern:$0x73625140]  ;;  %v605_v15 = vsel %vm219_vm0, %v2136_v33, 0  ;;  %v607_v28 = vsel %vm219_vm0, %v2138_v34, 0 }
  0x66   : > { %650 = vst [vmem:[#allocation1] ss:$4 sm:$0xff] %v310_v14  ;;  %v609_v26 = vsel %vm219_vm0, %v2140_v35, 0 }
  0x6d   : > { %v653_v36 = vld.sshfl [vmem:[#allocation1 + $0x8] sm:$0xff pattern:$0x73625140]  ;;  %v655_v37 = vld.sshfl [vmem:[#allocation1 + $0x10] sm:$0xff pattern:$0x73625140] }
  0x6e   : > { %659 = vrot.lane.b32.xlu1 %v653_v36, %s2021_s11  ;;  %v651_v38 = vld.sshfl [vmem:[#allocation1] sm:$0xff pattern:$0x73625140]  ;;  %661 = vrot.lane.b32.xlu2 %v655_v37, %s2021_s11 }
  0x6f   : > { %657 = vrot.lane.b32.xlu0 %v651_v38, %s2021_s11  ;;  %717 = vst [vmem:[#allocation1] ss:$4 sm:$0xff] %v383_v18  ;;  %v235_v37 = vld [vmem:[%s2504_s2] sm:$0x3] }
  0x76   : > { %v722_v39 = vld.sshfl [vmem:[#allocation1 + $0x10] sm:$0xff pattern:$0x73625140]  ;;  %v718_v40 = vld.sshfl [vmem:[#allocation1] sm:$0xff pattern:$0x73625140] }
  0x77   : > { %728 = vrot.lane.b32.xlu1 %v722_v39, %s2022_s12  ;;  %v720_v41 = vld.sshfl [vmem:[#allocation1 + $0x8] sm:$0xff pattern:$0x73625140]  ;;  %724 = vrot.lane.b32.xlu2 %v718_v40, %s2022_s12 }
  0x78   : > { %726 = vrot.lane.b32.xlu0 %v720_v41, %s2022_s12  ;;  %784 = vst [vmem:[#allocation1] ss:$4 sm:$0xff] %v456_v22 }
  0x7f   : > { %v789_v42 = vld.sshfl [vmem:[#allocation1 + $0x10] sm:$0xff pattern:$0x73625140]  ;;  %v785_v43 = vld.sshfl [vmem:[#allocation1] sm:$0xff pattern:$0x73625140] }
  0x80   : > { %795 = vrot.lane.b32.xlu0 %v789_v42, %s2023_s13  ;;  %791 = vrot.lane.b32.xlu1 %v785_v43, %s2023_s13  ;;  %v787_v44 = vld.sshfl [vmem:[#allocation1 + $0x8] sm:$0xff pattern:$0x73625140] }
  0x81   : > { %793 = vrot.lane.b32.xlu2 %v787_v44, %s2023_s13 }
  0x9b   : > { %v324_v45 = vpop.permute.xlu2 %323 }
  0xa5   : > { %v395_v52 = vpop.permute.xlu2 %394 }
  0xaa   : > { %v252_v46 = vpop.permute.xlu0 %251  ;;  %v250_v47 = vpop.permute.xlu1 %249 }
  0xab   : > { %v267_v48 = vsel %vm219_vm0, %v252_v46, 0  ;;  %v255_v49 = vsel %vm253_vm7, %v250_v47, %v252_v46 }
  0xac   : > { %302 = vmatpush.bf16.msra.mxu2 %v267_v48  ;;  %v264_v50 = vsel %vm219_vm0, %v255_v49, 0 }
  0xad   : > { %289 = vmatpush.bf16.msra.mxu1 %v264_v50  ;;  %v399_v60 = vpop.permute.xlu2 %398 }
  0xae   : > { %v413_v4 = vsel %vm219_vm0, %v399_v60, 0 }
  0xaf   : > { %1811 = vmatmul.msk.bf16.vlgmr.msra.gmra.mxu2 %vm2515_vm8, %v1808_v51 }
  0xb0   : > { %1810 = vmatmul.msk.bf16.vlgmr.msra.gmra.mxu1 %vm2515_vm8, %v1808_v51 }
  0xb2   : > { %v248_v53 = vpop.permute.xlu0 %247 }
  0xb3   : > { %v322_v54 = vpop.permute.xlu1 %321  ;;  %v254_v55 = vsel %vm253_vm7, %v248_v53, %v250_v47  ;;  %v1812_v47 = vld [vmem:[%s2504_s2 + $0x4] sm:$0x3] }
  0xb4   : > { %v261_v56 = vsel %vm219_vm0, %v254_v55, 0  ;;  %v328_v57 = vsel %vm2513_vm9, %v322_v54, %v324_v45 }
  0xb5   : > { %276 = vmatpush.bf16.msra.mxu0 %v261_v56  ;;  %v334_v58 = vsel %vm219_vm0, %v328_v57, 0  ;;  %v468_v9 = vpop.permute.xlu2 %467  ;;  %v1817_v56 = vld [vmem:[%s2504_s2 + $0x8] sm:$0x3]  ;;  %v1822_v57 = vld [vmem:[%s2504_s2 + $0xc] sm:$0x3] }
  0xb6   : > { %349 = vmatpush.bf16.msra.mxu3 %v334_v58 }
  0xb8   : > { %1809 = vmatmul.msk.bf16.vlgmr.msra.gmra.mxu0 %vm2515_vm8, %v1808_v51 }
  0xb9   : > { %1814 = vmatmul.msk.bf16.vlgmr.msra.gmra.mxu3 %vm2515_vm8, %v1813_v59 }
  0xbb   : > { %v326_v61 = vpop.permute.xlu1 %325 }
  0xbc   : > { %v397_v62 = vpop.permute.xlu0 %396  ;;  %v329_v63 = vsel %vm2513_vm9, %v324_v45, %v326_v61  ;;  %v340_v1 = vsel %vm219_vm0, %v326_v61, 0  ;;  %vm958_vm9 = vcmask 244736  }
  0xbd   : > { %v337_v2 = vsel %vm219_vm0, %v329_v63, 0  ;;  %375 = vmatpush.bf16.msrb.mxu1 %v340_v1  ;;  %v401_v3 = vsel %vm2512_vm10, %v395_v52, %v397_v62  ;;  %v402_v5 = vsel %vm2512_vm10, %v397_v62, %v399_v60  ;;  %v541_v18 = vpop.permute.xlu2 %540 }
  0xbe   : > { %362 = vmatpush.bf16.msrb.mxu0 %v337_v2  ;;  %v407_v6 = vsel %vm219_vm0, %v401_v3, 0  ;;  %v410_v7 = vsel %vm219_vm0, %v402_v5, 0 }
  0xbf   : > { %422 = vmatpush.bf16.msrb.mxu2 %v407_v6  ;;  %435 = vmatpush.bf16.msrb.mxu3 %v410_v7 }
  0xc0   : > { %1816 = vmatmul.msk.bf16.vlgmr.msrb.gmra.mxu1 %vm2515_vm8, %v1813_v59 }
  0xc2   : > { %448 = vmatpush.bf16.msra.mxu0 %v413_v4  ;;  %1819 = vmatmul.msk.bf16.vlgmr.msrb.gmra.mxu2 %vm2515_vm8, %v1818_v8 }
  0xc5   : > { %v472_v10 = vpop.permute.xlu1 %471 }
  0xc6   : > { %v486_v11 = vsel %vm219_vm0, %v472_v10, 0  ;;  %v470_v12 = vpop.permute.xlu0 %469 }
  0xc7   : > { %v475_v13 = vsel %vm2511_vm11, %v470_v12, %v472_v10  ;;  %v474_v14 = vsel %vm2511_vm11, %v468_v9, %v470_v12  ;;  %521 = vmatpush.bf16.msra.mxu3 %v486_v11 }
  0xc8   : > { %1815 = vmatmul.msk.bf16.vlgmr.msrb.gmra.mxu0 %vm2515_vm8, %v1813_v59  ;;  %v483_v16 = vsel %vm219_vm0, %v475_v13, 0  ;;  %v480_v17 = vsel %vm219_vm0, %v474_v14, 0  ;;  %v662_v30 = vpop.permute.xlu2 %661 }
  0xc9   : > { %1820 = vmatmul.msk.bf16.vlgmr.msrb.gmra.mxu3 %vm2515_vm8, %v1818_v8  ;;  %495 = vmatpush.bf16.msra.mxu1 %v480_v17  ;;  %v676_v38 = vsel %vm219_vm0, %v662_v30, 0 }
  0xca   : > { %508 = vmatpush.bf16.msra.mxu2 %v483_v16 }
  0xcb   : > { %618 = vmatpush.bf16.msrb.mxu3 %v605_v15 }
  0xce   : > { %v543_v20 = vpop.permute.xlu0 %542 }
  0xcf   : > { %v557_v21 = vsel %vm219_vm0, %v543_v20, 0  ;;  %v546_v22 = vsel %vm2510_vm12, %v541_v18, %v543_v20  ;;  %v539_v23 = vpop.permute.xlu1 %538 }
  0xd0   : > { %1824 = vmatmul.msk.bf16.vlgmr.msra.gmra.mxu1 %vm2515_vm8, %v1823_v19  ;;  %v554_v24 = vsel %vm219_vm0, %v546_v22, 0  ;;  %592 = vmatpush.bf16.msrb.mxu2 %v557_v21  ;;  %v545_v25 = vsel %vm2510_vm12, %v539_v23, %v541_v18 }
  0xd1   : > { %579 = vmatpush.bf16.msrb.mxu1 %v554_v24  ;;  %v551_v27 = vsel %vm219_vm0, %v545_v25, 0  ;;  %v725_v39 = vpop.permute.xlu2 %724 }
  0xd2   : > { %1825 = vmatmul.msk.bf16.vlgmr.msra.gmra.mxu2 %vm2515_vm8, %v1823_v19  ;;  %566 = vmatpush.bf16.msrb.mxu0 %v551_v27 }
  0xd5   : > { %644 = vmatpush.bf16.msra.mxu1 %v609_v26 }
  0xd8   : > { %1821 = vmatmul.msk.bf16.vlgmr.msra.gmra.mxu0 %vm2515_vm8, %v1818_v8 }
  0xd9   : > { %1826 = vmatmul.msk.bf16.vlgmr.msra.gmra.mxu3 %vm2515_vm8, %v1823_v19  ;;  %631 = vmatpush.bf16.msra.mxu0 %v607_v28 }
  0xdb   : > { %v794_v48 = vpop.permute.xlu2 %793 }
  0xe0   : > { %1829 = vmatmul.msk.bf16.vlgmr.msrb.gmra.mxu1 %vm2515_vm8, %v1827_v29  ;;  %v660_v31 = vpop.permute.xlu1 %659 }
  0xe1   : > { %v658_v32 = vpop.permute.xlu0 %657  ;;  %v665_v33 = vsel %vm2514_vm13, %v660_v31, %v662_v30 }
  0xe2   : > { %1830 = vmatmul.msk.bf16.vlgmr.msrb.gmra.mxu2 %vm2515_vm8, %v1827_v29  ;;  %v664_v34 = vsel %vm2514_vm13, %v658_v32, %v660_v31  ;;  %v673_v35 = vsel %vm219_vm0, %v665_v33, 0 }
  0xe3   : > { %v670_v36 = vsel %vm219_vm0, %v664_v34, 0  ;;  %698 = vmatpush.bf16.msra.mxu3 %v673_v35 }
  0xe4   : > { %685 = vmatpush.bf16.msra.mxu2 %v670_v36 }
  0xe8   : > { %1828 = vmatmul.msk.bf16.vlgmr.msrb.gmra.mxu0 %vm2515_vm8, %v1827_v29 }
  0xe9   : > { %1831 = vmatmul.msk.bf16.vlgmr.msrb.gmra.mxu3 %vm2515_vm8, %v235_v37  ;;  %v729_v40 = vpop.permute.xlu1 %728  ;;  %711 = vmatpush.bf16.msrb.mxu0 %v676_v38 }
  0xea   : > { %v743_v41 = vsel %vm219_vm0, %v729_v40, 0  ;;  %v727_v42 = vpop.permute.xlu0 %726 }
  0xeb   : > { %v732_v43 = vsel %vm2508_vm14, %v727_v42, %v729_v40  ;;  %v731_v44 = vsel %vm2508_vm14, %v725_v39, %v727_v42  ;;  %778 = vmatpush.bf16.msrb.mxu3 %v743_v41 }
  0xec   : > { %v740_v45 = vsel %vm219_vm0, %v732_v43, 0  ;;  %v737_v46 = vsel %vm219_vm0, %v731_v44, 0 }
  0xed   : > { %752 = vmatpush.bf16.msrb.mxu1 %v737_v46  ;;  %765 = vmatpush.bf16.msrb.mxu2 %v740_v45  ;;  %v2254_v45 = vld [vmem:[%s2503_s1] sm:$0x7] }
  0xee   : > { %vm198_vm2 = vcmp.lt.s32.totalorder %v2254_v45, 16 }
  0xf0   : > { %1833 = vmatmul.msk.bf16.vlgmr.msra.gmra.mxu1 %vm2515_vm8, %v235_v37 }
  0xf2   : > { %1834 = vmatmul.msk.bf16.vlgmr.msra.gmra.mxu2 %vm2515_vm8, %v1812_v47  ;;  %v796_v49 = vpop.permute.xlu0 %795  ;;  %v792_v50 = vpop.permute.xlu1 %791 }
  0xf3   : > { %v810_v51 = vsel %vm219_vm0, %v796_v49, 0  ;;  %v799_v52 = vsel %vm2507_vm15, %v794_v48, %v796_v49  ;;  %v798_v53 = vsel %vm2507_vm15, %v792_v50, %v794_v48  ;;  %vm2509_vm15 = vcmask 257024  }
  0xf4   : > { %v807_v54 = vsel %vm219_vm0, %v799_v52, 0  ;;  %845 = vmatpush.bf16.msra.mxu2 %v810_v51  ;;  %v804_v55 = vsel %vm219_vm0, %v798_v53, 0 }
  0xf5   : > { %832 = vmatpush.bf16.msra.mxu1 %v807_v54  ;;  %v2024_v54 = vmov 0  }
  0xf8   : > { %1832 = vmatmul.msk.bf16.vlgmr.msra.gmra.mxu0 %vm2515_vm8, %v235_v37 }
  0xf9   : > { %1835 = vmatmul.msk.bf16.vlgmr.msra.gmra.mxu3 %vm2515_vm8, %v1812_v47  ;;  %819 = vmatpush.bf16.msra.mxu0 %v804_v55  ;;  %v863_v55 = vsel %vm198_vm2, 1, %v2024_v54 }
 0x100   : > { %1837 = vmatmul.msk.bf16.vlgmr.msrb.gmra.mxu1 %vm2515_vm8, %v1817_v56 }
 0x102   : > { %1838 = vmatmul.msk.bf16.vlgmr.msrb.gmra.mxu2 %vm2515_vm8, %v1817_v56 }
 0x108   : > { %1836 = vmatmul.msk.bf16.vlgmr.msrb.gmra.mxu0 %vm2515_vm8, %v1812_v47 }
 0x109   : > { %1839 = vmatmul.msk.bf16.vlgmr.msrb.gmra.mxu3 %vm2515_vm8, %v1817_v56 }
 0x110   : > { %1841 = vmatmul.msk.bf16.vlgmr.msra.gmra.mxu1 %vm2515_vm8, %v1822_v57 }
 0x112   : > { %1842 = vmatmul.msk.bf16.vlgmr.msra.gmra.mxu2 %vm2515_vm8, %v1822_v57 }
 0x118   : > { %1840 = vmatmul.msk.bf16.vlgmr.msra.gmra.mxu0 %vm2515_vm8, %v1822_v57 }
 0x12d   : > { %v291_v58 = vpop.f32.mrf.mxu1 }
 0x132   : > { %v304_v59 = vpop.f32.mrf.mxu2 }
 0x135   : > { %v278_v60 = vpop.f32.mrf.mxu0  ;;  %v293_v61 = vpop.f32.mrf.mxu1 }
 0x13a   : > { %v306_v62 = vpop.f32.mrf.mxu2 }
 0x13c   : > { %v351_v63 = vpop.f32.mrf.mxu3 }
 0x13d   : > { %v280_v1 = vpop.f32.mrf.mxu0  ;;  %v377_v2 = vpop.f32.mrf.mxu1 }
 0x144   : > { %v353_v3 = vpop.f32.mrf.mxu3 }
 0x145   : > { %v424_v4 = vpop.f32.mrf.mxu2  ;;  %v364_v5 = vpop.f32.mrf.mxu0 }
 0x146   : > { %v379_v6 = vpop.f32.mrf.mxu1 }
 0x14c   : > { %v437_v7 = vpop.f32.mrf.mxu3 }
 0x14d   : > { %v426_v8 = vpop.f32.mrf.mxu2  ;;  %v366_v9 = vpop.f32.mrf.mxu0 }
 0x14e   : > { %v497_v10 = vpop.f32.mrf.mxu1  ;;  %v864_v9 = vperm.slane %v863_v55, 0 }
 0x150   : > { %vm2264_vm6 = vcmp.eq.s32.totalorder %v864_v9, 1 }
 0x154   : > { %v439_v11 = vpop.f32.mrf.mxu3 }
 0x155   : > { %v510_v12 = vpop.f32.mrf.mxu2  ;;  %v450_v13 = vpop.f32.mrf.mxu0 }
 0x156   : > { %v499_v14 = vpop.f32.mrf.mxu1 }
 0x15c   : > { %v523_v15 = vpop.f32.mrf.mxu3 }
 0x15d   : > { %v512_v16 = vpop.f32.mrf.mxu2  ;;  %v452_v17 = vpop.f32.mrf.mxu0 }
 0x15e   : > { %v581_v18 = vpop.f32.mrf.mxu1 }
 0x164   : > { %v525_v19 = vpop.f32.mrf.mxu3 }
 0x165   : > { %v594_v20 = vpop.f32.mrf.mxu2  ;;  %v568_v21 = vpop.f32.mrf.mxu0 }
 0x166   : > { %v583_v22 = vpop.f32.mrf.mxu1 }
 0x16c   : > { %v620_v23 = vpop.f32.mrf.mxu3 }
 0x16d   : > { %v596_v24 = vpop.f32.mrf.mxu2  ;;  %v570_v25 = vpop.f32.mrf.mxu0  ;;  %v621_v30 = vadd.f32 %v620_v23, %v278_v60  ;;  %v865_v60 = vperm.slane %v863_v55, 1 }
 0x16e   : > { %v646_v26 = vpop.f32.mrf.mxu1 }
 0x16f   : > { %v647_v41 = vadd.f32 %v646_v26, %v304_v59  ;;  %vm2258_vm3 = vcmp.eq.s32.totalorder %v865_v60, 1 }
 0x174   : > { %v622_v27 = vpop.f32.mrf.mxu3 }
 0x175   : > { %v687_v28 = vpop.f32.mrf.mxu2  ;;  %v633_v29 = vpop.f32.mrf.mxu0 }
 0x176   : > { %v688_v31 = vadd.f32 %v687_v28, %v351_v63  ;;  %v648_v32 = vpop.f32.mrf.mxu1  ;;  %v634_v51 = vadd.f32 %v633_v29, %v291_v58  ;;  %v866_v58 = vperm.slane %v863_v55, 2 }
 0x178   : > { %v851_v33 = vadd.f32 %v688_v31, %v621_v30  ;;  %vm2268_vm2 = vcmp.eq.s32.totalorder %v866_v58, 1 }
 0x17c   : > { %v700_v34 = vpop.f32.mrf.mxu3 }
 0x17d   : > { %v689_v35 = vpop.f32.mrf.mxu2  ;;  %v635_v36 = vpop.f32.mrf.mxu0  ;;  %v701_v47 = vadd.f32 %v700_v34, %v364_v5 }
 0x17e   : > { %v754_v37 = vpop.f32.mrf.mxu1 }
 0x17f   : > { %v852_v56 = vadd.f32 %v701_v47, %v634_v51  ;;  %v755_v62 = vadd.f32 %v754_v37, %v424_v4 }
 0x184   : > { %v702_v38 = vpop.f32.mrf.mxu3 }
 0x185   : > { %v767_v39 = vpop.f32.mrf.mxu2  ;;  %v713_v40 = vpop.f32.mrf.mxu0 }
 0x186   : > { %v714_v42 = vadd.f32 %v713_v40, %v377_v2  ;;  %v756_v43 = vpop.f32.mrf.mxu1  ;;  %v768_v52 = vadd.f32 %v767_v39, %v437_v7 }
 0x188   : > { %v853_v44 = vadd.f32 %v714_v42, %v647_v41 }
 0x18c   : > { %v780_v46 = vpop.f32.mrf.mxu3 }
 0x18d   : > { %v769_v48 = vpop.f32.mrf.mxu2  ;;  %v715_v49 = vpop.f32.mrf.mxu0  ;;  %v781_v2 = vadd.f32 %v780_v46, %v450_v13 }
 0x18e   : > { %v834_v50 = vpop.f32.mrf.mxu1 }
 0x18f   : > { %v835_v53 = vadd.f32 %v834_v50, %v510_v12 }
 0x191   : > { %v855_v57 = vadd.f32 %v835_v53, %v768_v52 }
 0x193   : > { %v858_v59 = vadd.f32 %v855_v57, %v852_v56 }
 0x194   : > { %v782_v61 = vpop.f32.mrf.mxu3 }
 0x195   : > { %v847_v63 = vpop.f32.mrf.mxu2  ;;  %v821_v1 = vpop.f32.mrf.mxu0  ;;  %v861_v3 = vadd.f32 %v858_v59, %v581_v18 }
 0x196   : > { %v848_v5 = vadd.f32 %v847_v63, %v523_v15  ;;  %v822_v6 = vadd.f32 %v821_v1, %v497_v10  ;;  %v836_v8 = vpop.f32.mrf.mxu1 }
 0x197   : > { %v871_v4 = vsel %vm2258_vm3, %v861_v3, 0.0 }
 0x198   : > { %v856_v11 = vadd.f32 %v848_v5, %v781_v2  ;;  %v854_v12 = vadd.f32 %v822_v6, %v755_v62  ;;  %v882_v22 = vmul.f32 %v871_v4, %v871_v4  ;;  %v874_v26 = vsel %vm227_vm5, %v871_v4, 0.0 }
 0x19a   : > { %v859_v14 = vadd.f32 %v856_v11, %v853_v44  ;;  %v857_v16 = vadd.f32 %v854_v12, %v851_v33  ;;  %v885_v30 = vsel %vm227_vm5, %v882_v22, 0.0 }
 0x19c   : > { %v860_v13 = vadd.f32 %v857_v16, %v568_v21  ;;  %v862_v15 = vadd.f32 %v859_v14, %v594_v20 }
 0x19d   : > { %v849_v18 = vpop.f32.mrf.mxu2  ;;  %v823_v19 = vpop.f32.mrf.mxu0 }
 0x19e   : > { %v870_v23 = vsel %vm2264_vm6, %v860_v13, 0.0  ;;  %v872_v24 = vsel %vm2268_vm2, %v862_v15, 0.0 }
 0x19f   : > { %v873_v25 = vsel %vm227_vm5, %v870_v23, 0.0  ;;  %v881_v27 = vmul.f32 %v870_v23, %v870_v23  ;;  %v883_v28 = vmul.f32 %v872_v24, %v872_v24  ;;  %v877_v21 = vsel %vm2509_vm15, %v872_v24, 0.0 }
 0x1a0   : > { %v875_v29 = vadd.f32 %v874_v26, %v873_v25 }
 0x1a1   : > { %v884_v20 = vsel %vm227_vm5, %v881_v27, 0.0  ;;  %v887_v33 = vsel %vm2509_vm15, %v883_v28, 0.0 }
 0x1a2   : > { %v878_v31 = vadd.f32 %v877_v21, %v875_v29  ;;  %v886_v32 = vadd.f32 %v885_v30, %v884_v20 }
 0x1a4   : > { %879 = vadd.xlane.f32.xlu0 %v878_v31  ;;  %v888_v34 = vadd.f32 %v887_v33, %v886_v32 }
 0x1a6   : > { %889 = vadd.xlane.f32.xlu1 %v888_v34 }
 0x217   : > { %v880_v35 = vpop.xlane.xlu0 %879 }
 0x218   : > { %v891_v36 = vmul.f32 0.00390625, %v880_v35 }
 0x219   : > { %v890_v37 = vpop.xlane.xlu1 %889 }
 0x21a   : > { %v892_v38 = vmul.f32 0.00390625, %v890_v37  ;;  %v893_v39 = vmul.f32 %v891_v36, %v891_v36  ;;  %v896_v50 = vsub.f32 %v860_v13, %v891_v36  ;;  %v897_v51 = vsub.f32 %v861_v3, %v891_v36 }
 0x21b   : > { %v898_v59 = vsub.f32 %v862_v15, %v891_v36 }
 0x21c   : > { %v894_v40 = vsub.f32 %v892_v38, %v893_v39 }
 0x21e   : > { %v895_v41 = vmax.f32 %v894_v40, 0.0 }
 0x220   : > { %v899_v42 = vadd.f32 1e-05, %v895_v41 }
 0x222   : > { %1948 = vrsqrt.f32 %v899_v42  ;;  %vm906_vm15 = vweird.f32 %v899_v42 }
 0x228   : > { %v1949_v43 = vpop.eup %1948 }
 0x229   : > { %v901_v44 = vmul.f32 %v1949_v43, %v899_v42  ;;  %vm907_vm14 = vweird.f32 %v1949_v43 }
 0x22a   : > { %vm908_vm12 = vmor %vm906_vm15, %vm907_vm14  ;;  %vm922_vm14 = vcmp.eq.s32.totalorder %v2254_v45, 16 }
 0x22b   : > { %v902_v46 = vmul.f32 %v1949_v43, %v901_v44  ;;  %v970_v14 = vsel %vm922_vm14, 1, %v2024_v54 }
 0x22c   : > { %v971_v18 = vperm.slane %v970_v14, 0  ;;  %v972_v19 = vperm.slane %v970_v14, 1  ;;  %v973_v28 = vperm.slane %v970_v14, 2 }
 0x22d   : > { %v903_v47 = vmul.f32 0.5, %v902_v46 }
 0x22e   : > { %vm975_vm14 = vcmp.eq.s32.totalorder %v972_v19, 1  ;;  %vm976_vm8 = vcmp.eq.s32.totalorder %v973_v28, 1 }
 0x22f   : > { %v904_v48 = vsub.f32 1.5, %v903_v47 }
 0x231   : > { %v905_v49 = vmul.f32 %v1949_v43, %v904_v48 }
 0x233   : > { %v909_v52 = vsel %vm908_vm12, %v1949_v43, %v905_v49 }
 0x234   : > { %v910_v53 = vmul.f32 %v909_v52, %v896_v50  ;;  %v911_v55 = vmul.f32 %v909_v52, %v897_v51  ;;  %v912_v1 = vmul.f32 %v909_v52, %v898_v59 }
 0x236   : > { %vm913_vm11 = vcmp.ge.f32.partialorder %v910_v53, 0.0  ;;  %vm914_vm10 = vcmp.ge.f32.partialorder %v911_v55, 0.0  ;;  %v916_v56 = vmul.f32 0.2, %v910_v53  ;;  %v917_v57 = vmul.f32 0.2, %v911_v55 }
 0x237   : > { %v918_v3 = vmul.f32 0.2, %v912_v1  ;;  %vm915_vm12 = vcmp.ge.f32.partialorder %v912_v1, 0.0 }
 0x238   : > { %v919_v60 = vsel %vm913_vm11, %v910_v53, %v916_v56  ;;  %v920_v61 = vsel %vm914_vm10, %v911_v55, %v917_v57  ;;  %vm980_vm10 = vcmask 566816   ;;  %vm942_vm11 = vcmp.eq.s32.totalorder %v2254_v45, 17 }
 0x239   : > { %v1938_v62 = vpack.i.bf16 %v920_v61, %v919_v60  ;;  %v1008_v63 = vpack.c.bf16 %v919_v60, %v919_v60  ;;  %v921_v6 = vsel %vm915_vm12, %v912_v1, %v918_v3  ;;  %981 = vst.msk [vmem:[#allocation3 + $0x4] sm:$0x3] %vm980_vm10, %v2024_v54  ;;  %v960_v11 = vsel %vm942_vm11, 1, %v2024_v54 }
 0x23a   : > { %v961_v16 = vperm.slane %v960_v11, 0  ;;  %v962_v15 = vperm.slane %v960_v11, 1  ;;  %vm935_vm10 = vcmask 15360   ;;  %vm974_vm11 = vcmp.eq.s32.totalorder %v971_v18, 1 }
 0x23b   : > { %1939 = vrot.lane.b32.xlu2 %v1938_v62, %s2021_s11  ;;  %v1010_v2 = vrot.slane %v1008_v63, 2  ;;  %v963_v27 = vperm.slane %v960_v11, 2 }
 0x23c   : > { %vm2290_vm15 = vcmp.eq.s32.totalorder %v961_v16, 1  ;;  %vm2295_vm12 = vcmp.eq.s32.totalorder %v962_v15, 1 }
 0x23d   : > { %v1013_v5 = vsel %vm219_vm0, %v1008_v63, %v1010_v2 }
 0x23e   : > { %1015 = vrot.lane.b32.xlu1 %v1013_v5, %s2025_s27 }
 0x243   : > { %947 = vrot.lane.b32.xlu2 %v921_v6, %s2021_s11 }
 0x24b   : > { %955 = vrot.lane.b32.xlu2 %v919_v60, %s2026_s28 }
 0x253   : > { %924 = vrot.lane.b32.xlu2 %v921_v6, %s2027_s29 }
 0x25b   : > { %1944 = vrot.lane.b32.xlu2 %v1938_v62, %s2028_s30 }
 0x263   : > { %933 = vrot.lane.b32.xlu2 %v921_v6, %s2028_s30 }
 0x295   : > { %v1940_v8 = vpop.permute.xlu2 %1939 }
 0x296   : > { %v1942_v4 = vunpack.i.h.bf16 %v1940_v8  ;;  %v1941_v13 = vunpack.i.l.bf16 %v1940_v8 }
 0x298   : > { %v950_v23 = vsel %vm2514_vm13, %v1941_v13, %v1942_v4 }
 0x299   : > { %v967_v29 = vsel %vm2290_vm15, %v950_v23, %v919_v60 }
 0x29d   : > { %v948_v9 = vpop.permute.xlu2 %947 }
 0x29e   : > { %v951_v45 = vsel %vm2514_vm13, %v1942_v4, %v948_v9  ;;  %vm966_vm13 = vcmp.eq.s32.totalorder %v963_v27, 1 }
 0x29f   : > { %v968_v21 = vsel %vm2295_vm12, %v951_v45, %v920_v61  ;;  %vm1005_vm12 = vcmask 414724  }
 0x2a5   : > { %v956_v58 = vpop.permute.xlu2 %955 }
 0x2a6   : > { %v959_v33 = vsel %vm958_vm9, %v948_v9, %v956_v58  ;;  %vm1003_vm9 = vcmask 1041560  }
 0x2a7   : > { %v969_v36 = vsel %vm966_vm13, %v959_v33, %v921_v6  ;;  %vm1004_vm15 = vmor %vm230_vm1, %vm1003_vm9  ;;  %vm1000_vm13 = vcmask 154624   ;;  %vm1032_vm1 = vcmask 550288  }
 0x2ad   : > { %v925_v12 = vpop.permute.xlu2 %924 }
 0x2b0   : > { %v1016_v50 = vpop.permute.xlu1 %1015 }
 0x2b5   : > { %v1945_v25 = vpop.permute.xlu2 %1944 }
 0x2b6   : > { %v1947_v54 = vunpack.i.h.bf16 %v1945_v25  ;;  %v1946_v26 = vunpack.i.l.bf16 %v1945_v25 }
 0x2b8   : > { %v936_v20 = vsel %vm935_vm10, %v1946_v26, %v1947_v54  ;;  %v941_v30 = vsel %vm935_vm10, %v925_v12, %v1946_v26 }
 0x2b9   : > { %v977_v31 = vsel %vm974_vm11, %v941_v30, %v967_v29  ;;  %v978_v32 = vsel %vm975_vm14, %v936_v20, %v968_v21  ;;  %vm2528_vm11 = vcmask 31744  }
 0x2ba   : > { %v982_v34 = vpack.c.bf16 %v978_v32, %v977_v31  ;;  %vm2529_vm14 = vmmov %vm2528_vm11 }
 0x2bb   : > { %vm2530_vm9 = vmmov %vm2528_vm11 }
 0x2bc   : > { %v986_v40 = vrot.slane %v982_v34, 2 }
 0x2bd   : > { %v934_v35 = vpop.permute.xlu2 %933 }
 0x2be   : > { %v937_v37 = vsel %vm935_vm10, %v1947_v54, %v934_v35  ;;  %v991_v43 = vsel %vm219_vm0, %v982_v34, %v986_v40  ;;  %vm1006_vm10 = vmor %vm1005_vm12, %vm1004_vm15  ;;  %v1696_v54 = vld [vmem:[%s2109_s5 + $0x8] sm:$0xf]  ;;  %v1843_v35 = vld [vmem:[%s2505_s3 + $0x2] sm:$0x3] }
 0x2bf   : > { %v979_v38 = vsel %vm976_vm8, %v937_v37, %v969_v36  ;;  %vm1018_vm8 = vcmask 148624   ;;  %vm2533_vm12 = vmmov %vm2530_vm9 }
 0x2c0   : > { %v983_v39 = vpack.c.bf16 %v979_v38, %v979_v38 }
 0x2c2   : > { %v987_v41 = vrot.slane %v983_v39, 4  ;;  %v988_v42 = vrot.slane %v983_v39, 6 }
 0x2c4   : > { %v994_v44 = vsel %vm223_vm4, %v987_v41, %v988_v42  ;;  %vm1025_vm4 = vcmask 140288  }
 0x2c5   : > { %v995_v46 = vsel %vm227_vm5, %v991_v43, %v994_v44  ;;  %v1848_v43 = vld [vmem:[%s2505_s3 + $0x6] sm:$0x3] }
 0x2c6   : > { %997 = vrot.lane.b32.xlu0 %v995_v46, %s2029_s14  ;;  %s1972_s14 = scalar_lea.hbm %s2506_s4, 24 }
 0x338   : > { %v998_v47 = vpop.permute.xlu0 %997 }
 0x339   : > { %v999_v48 = vrot.slane %v998_v47, 6 }
 0x33b   : > { %v1001_v49 = vsel %vm1000_vm13, %v999_v48, %v998_v47  ;;  %vm2534_vm13 = vcmask 883712  }
 0x33c   : > { %1007 = vst.msk [vmem:[#allocation3] sm:$0x3f] %vm1006_vm10, %v1001_v49  ;;  %vm2535_vm10 = vmmov %vm2534_vm13 }
 0x33d   : > { %1019 = vst.msk [vmem:[#allocation3] sm:$0x3] %vm1018_vm8, %v1016_v50  ;;  %vm2536_vm8 = vmmov %vm2530_vm9 }
 0x343   : > { %v1027_v52 = vld [vmem:[#allocation3 + $0x4] sm:$0x3] }
 0x344   : > { %v1020_v51 = vld [vmem:[#allocation3] sm:$0x3] }
 0x345   : > { %1022 = vrot.lane.b32.xlu2 %v1020_v51, %s2023_s13 }
 0x34d   : > { %1029 = vrot.lane.b32.xlu2 %v1027_v52, %s2030_s20 }
 0x39f   : > { %v1023_v53 = vpop.permute.xlu2 %1022 }
 0x3a0   : > { %1026 = vst.msk [vmem:[#allocation3] sm:$0x3] %vm1025_vm4, %v1023_v53  ;;  %v1853_v53 = vld [vmem:[%s2505_s3 + $0xa] sm:$0x3]  ;;  %vm2537_vm4 = vmmov %vm2536_vm8 }
 0x3a7   : > { %v1030_v55 = vpop.permute.xlu2 %1029 }
 0x3a8   : > { %1033 = vst.msk [vmem:[#allocation3 + $0x4] sm:$0x3] %vm1032_vm1, %v1030_v55  ;;  %vm2538_vm1 = vmmov %vm2537_vm4 }
 0x3af   : > { %v1035_v56 = vld [vmem:[#allocation3] sm:$0x3f] }
 0x3b0   : > { %1039 = vst [vmem:[#allocation1] ss:$4 sm:$0xff] %v1035_v56  ;;  %v1107_v60 = vld [vmem:[#allocation3] sm:$0x3f] }
 0x3b1   : > { %v1179_v1 = vld [vmem:[#allocation3] sm:$0x3f] }
 0x3b2   : > { %v1251_v6 = vld [vmem:[#allocation3] sm:$0x3f] }
 0x3b3   : > { %v1323_v11 = vld [vmem:[#allocation3] sm:$0x3f] }
 0x3b7   : > { %v1044_v57 = vld.sshfl [vmem:[#allocation1 + $0x10] sm:$0xff pattern:$0x73625140]  ;;  %v1042_v59 = vld.sshfl [vmem:[#allocation1 + $0x8] sm:$0xff pattern:$0x73625140] }
 0x3b8   : > { %1050 = vrot.lane.b32.xlu1 %v1044_v57, %s2016_s6  ;;  %1048 = vrot.lane.b32.xlu2 %v1042_v59, %s2016_s6  ;;  %v1040_v61 = vld.sshfl [vmem:[#allocation1] sm:$0xff pattern:$0x73625140] }
 0x3b9   : > { %1046 = vrot.lane.b32.xlu0 %v1040_v61, %s2016_s6  ;;  %1111 = vst [vmem:[#allocation1] ss:$4 sm:$0xff] %v1107_v60 }
 0x3c0   : > { %v1116_v62 = vld.sshfl [vmem:[#allocation1 + $0x10] sm:$0xff pattern:$0x73625140]  ;;  %v1114_v63 = vld.sshfl [vmem:[#allocation1 + $0x8] sm:$0xff pattern:$0x73625140] }
 0x3c1   : > { %1122 = vrot.lane.b32.xlu2 %v1116_v62, %s2017_s7  ;;  %1120 = vrot.lane.b32.xlu0 %v1114_v63, %s2017_s7  ;;  %v1112_v2 = vld.sshfl [vmem:[#allocation1] sm:$0xff pattern:$0x73625140] }
 0x3c2   : > { %1118 = vrot.lane.b32.xlu1 %v1112_v2, %s2017_s7  ;;  %1183 = vst [vmem:[#allocation1] ss:$4 sm:$0xff] %v1179_v1  ;;  %v1858_v2 = vld [vmem:[%s2505_s3 + $0xe] sm:$0x3]  ;;  %s1883_s7 = smul.u32 12, %s2077_s19 }
 0x3c9   : > { %v1188_v5 = vld.sshfl [vmem:[#allocation1 + $0x10] sm:$0xff pattern:$0x73625140]  ;;  %v1186_v3 = vld.sshfl [vmem:[#allocation1 + $0x8] sm:$0xff pattern:$0x73625140] }
 0x3ca   : > { %1194 = vrot.lane.b32.xlu1 %v1188_v5, %s2018_s8  ;;  %1192 = vrot.lane.b32.xlu2 %v1186_v3, %s2018_s8  ;;  %v1184_v8 = vld.sshfl [vmem:[#allocation1] sm:$0xff pattern:$0x73625140] }
 0x3cb   : > { %1190 = vrot.lane.b32.xlu0 %v1184_v8, %s2018_s8  ;;  %1255 = vst [vmem:[#allocation1] ss:$4 sm:$0xff] %v1251_v6 }
 0x3d2   : > { %v1260_v9 = vld.sshfl [vmem:[#allocation1 + $0x10] sm:$0xff pattern:$0x73625140]  ;;  %v1258_v58 = vld.sshfl [vmem:[#allocation1 + $0x8] sm:$0xff pattern:$0x73625140] }
 0x3d3   : > { %1266 = vrot.lane.b32.xlu1 %v1260_v9, %s2019_s9  ;;  %1264 = vrot.lane.b32.xlu2 %v1258_v58, %s2019_s9  ;;  %v1256_v12 = vld.sshfl [vmem:[#allocation1] sm:$0xff pattern:$0x73625140] }
 0x3d4   : > { %1262 = vrot.lane.b32.xlu0 %v1256_v12, %s2019_s9  ;;  %1325 = vst [vmem:[#allocation1] ss:$4 sm:$0xff] %v1323_v11 }
 0x3db   : > { %v1330_v14 = vld.sshfl [vmem:[#allocation1 + $0x10] sm:$0xff pattern:$0x73625140]  ;;  %v1328_v16 = vld.sshfl [vmem:[#allocation1 + $0x8] sm:$0xff pattern:$0x73625140] }
 0x3dc   : > { %1336 = vrot.lane.b32.xlu1 %v1330_v14, %s2020_s10  ;;  %1334 = vrot.lane.b32.xlu2 %v1328_v16, %s2020_s10  ;;  %v1326_v4 = vld.sshfl [vmem:[#allocation1] sm:$0xff pattern:$0x73625140] }
 0x3dd   : > { %1332 = vrot.lane.b32.xlu0 %v1326_v4, %s2020_s10  ;;  %1391 = vst [vmem:[#allocation1] ss:$4 sm:$0xff] %v1035_v56  ;;  %v1862_v4 = vld [vmem:[%s2505_s3 + $0x10] sm:$0x3] }
 0x3e4   : > { %v2327_v13 = vld.sshfl [vmem:[#allocation1] sm:$0xff pattern:$0x73625140]  ;;  %v2329_v15 = vld.sshfl [vmem:[#allocation1 + $0x8] sm:$0xff pattern:$0x73625140] }
 0x3e5   : > { %v2331_v18 = vld.sshfl [vmem:[#allocation1 + $0x10] sm:$0xff pattern:$0x73625140]  ;;  %v1400_v16 = vsel %vm219_vm0, %v2329_v15, 0 }
 0x3e6   : > { %1443 = vst [vmem:[#allocation1] ss:$4 sm:$0xff] %v1107_v60  ;;  %v1402_v14 = vsel %vm219_vm0, %v2331_v18, 0 }
 0x3ed   : > { %v1448_v19 = vld.sshfl [vmem:[#allocation1 + $0x10] sm:$0xff pattern:$0x73625140]  ;;  %v1446_v22 = vld.sshfl [vmem:[#allocation1 + $0x8] sm:$0xff pattern:$0x73625140] }
 0x3ee   : > { %1454 = vrot.lane.b32.xlu1 %v1448_v19, %s2021_s11  ;;  %1452 = vrot.lane.b32.xlu2 %v1446_v22, %s2021_s11  ;;  %v1444_v23 = vld.sshfl [vmem:[#allocation1] sm:$0xff pattern:$0x73625140] }
 0x3ef   : > { %1450 = vrot.lane.b32.xlu0 %v1444_v23, %s2021_s11  ;;  %1509 = vst [vmem:[#allocation1] ss:$4 sm:$0xff] %v1179_v1  ;;  %v1398_v1 = vsel %vm219_vm0, %v2327_v13, 0  ;;  %s1739_s11 = scalar_lea.hbm %s2506_s4, %s1883_s7 }
 0x3f0   : > { %s1743_s22 = sshll.u32 %s1739_s11, 4  ;;  %s1744_s22 = int_to_ptr.hbm [resolvable:$true] %s1743_s22 }
 0x3f1   : > { %s1966_s27 = sshra.s32 %s1744_s22, 4  ;;  %s1967_s27 = int_to_ptr.hbm [resolvable:$true] %s1966_s27 }
 0x3f2   : > { %s1968_s28 = scalar_lea.hbm %s1967_s27, 12  ;;  %p1973_p0 = scmp.lt.s32.totalorder %s1967_s27, %s2506_s4 }
 0x3f3   : > { %p1969_p11 = scmp.ne.s32.totalorder %s1967_s27, %s1968_s28  ;;  %p1974_p1 = scmp.lt.s32.totalorder %s1972_s14, %s1968_s28 }
 0x3f5   : > { %p1970_p12 = pnand %p1969_p11, %p2094_p5  ;;  %p1975_p2 = por %p1974_p1, %p1973_p0 }
 0x3f6   : > { %v1514_v24 = vld.sshfl [vmem:[#allocation1 + $0x10] sm:$0xff pattern:$0x73625140]  ;;  %v1512_v45 = vld.sshfl [vmem:[#allocation1 + $0x8] sm:$0xff pattern:$0x73625140] }
 0x3f7   : > { %1520 = vrot.lane.b32.xlu1 %v1514_v24, %s2022_s12  ;;  %1518 = vrot.lane.b32.xlu2 %v1512_v45, %s2022_s12  ;;  %v1510_v25 = vld.sshfl [vmem:[#allocation1] sm:$0xff pattern:$0x73625140]  ;;  %p1971_p13 = pneg %p1970_p12 }
 0x3f8   : > { %1516 = vrot.lane.b32.xlu0 %v1510_v25, %s2022_s12  ;;  %1575 = vst [vmem:[#allocation1] ss:$4 sm:$0xff] %v1251_v6  ;;  %v1034_v25 = vld [vmem:[%s2505_s3] sm:$0x3] }
 0x3f9   : > { %p1976_p3 = pnand %p1975_p2, %p1971_p13 }
 0x3ff   : > { %v1580_v26 = vld.sshfl [vmem:[#allocation1 + $0x10] sm:$0xff pattern:$0x73625140]  ;;  %v1578_v27 = vld.sshfl [vmem:[#allocation1 + $0x8] sm:$0xff pattern:$0x73625140] }
 0x400   : > { %1586 = vrot.lane.b32.xlu1 %v1580_v26, %s2023_s13  ;;  %1701 = vst [vmem:[#allocation1 + $0x10] ss:$2 sm:$0xff] %v1696_v54  ;;  %1584 = vrot.lane.b32.xlu2 %v1578_v27, %s2023_s13  ;;  %v1576_v28 = vld.sshfl [vmem:[#allocation1] sm:$0xff pattern:$0x73625140] }
 0x401   : > { %1582 = vrot.lane.b32.xlu0 %v1576_v28, %s2023_s13  ;;  %1699 = vst [vmem:[#allocation1] ss:$2 sm:$0xff] %v2112_v0 }
 0x412   : > { %v1049_v29 = vpop.permute.xlu2 %1048 }
 0x41b   : > { %v1123_v21 = vpop.permute.xlu2 %1122 }
 0x41c   : > { %v1136_v36 = vsel %vm219_vm0, %v1123_v21, 0 }
 0x424   : > { %v1193_v44 = vpop.permute.xlu2 %1192 }
 0x42a   : > { %v1051_v20 = vpop.permute.xlu1 %1050 }
 0x42b   : > { %v1053_v30 = vsel %vm253_vm7, %v1049_v29, %v1051_v20  ;;  %v1064_v31 = vsel %vm219_vm0, %v1051_v20, 0  ;;  %v1047_v32 = vpop.permute.xlu0 %1046 }
 0x42c   : > { %v1061_v33 = vsel %vm219_vm0, %v1053_v30, 0  ;;  %v1052_v34 = vsel %vm253_vm7, %v1047_v32, %v1049_v29  ;;  %1099 = vmatpush.bf16.msrb.mxu1 %v1064_v31  ;;  %vm2531_vm7 = vcmask 900096   ;;  %v1847_v31 = vld [vmem:[%s2505_s3 + $0x4] sm:$0x3] }
 0x42d   : > { %v1058_v0 = vsel %vm219_vm0, %v1052_v34, 0  ;;  %1086 = vmatpush.bf16.msrb.mxu0 %v1061_v33  ;;  %vm2532_vm15 = vmmov %vm2531_vm7  ;;  %v1265_v55 = vpop.permute.xlu2 %1264 }
 0x42e   : > { %1073 = vmatpush.bf16.msra.mxu3 %v1058_v0 }
 0x42f   : > { %1846 = vmatmul.msk.bf16.vlgmr.msrb.gmra.mxu1 %vm2528_vm11, %v1843_v35  ;;  %vm2539_vm11 = vcmask 744448  }
 0x430   : > { %1845 = vmatmul.msk.bf16.vlgmr.msrb.gmra.mxu0 %vm2529_vm14, %v1843_v35  ;;  %vm2540_vm14 = vmmov %vm2539_vm11 }
 0x431   : > { %1171 = vmatpush.bf16.msra.mxu0 %v1136_v36  ;;  %1844 = vmatmul.msk.bf16.vlgmr.msra.gmra.mxu3 %vm2530_vm9, %v1843_v35  ;;  %vm2541_vm9 = vmmov %vm2538_vm1 }
 0x433   : > { %v1121_v37 = vpop.permute.xlu0 %1120 }
 0x434   : > { %v1125_v38 = vsel %vm2531_vm7, %v1121_v37, %v1123_v21  ;;  %v1119_v39 = vpop.permute.xlu1 %1118  ;;  %vm2542_vm7 = vcmask 736256  }
 0x435   : > { %v1133_v40 = vsel %vm219_vm0, %v1125_v38, 0  ;;  %v1124_v41 = vsel %vm2532_vm15, %v1119_v39, %v1121_v37  ;;  %vm2543_vm15 = vmmov %vm2542_vm7  ;;  %v1852_v39 = vld [vmem:[%s2505_s3 + $0x8] sm:$0x3] }
 0x436   : > { %v1130_v42 = vsel %vm219_vm0, %v1124_v41, 0  ;;  %1158 = vmatpush.bf16.msrb.mxu3 %v1133_v40  ;;  %v1335_v5 = vpop.permute.xlu2 %1334  ;;  %v1857_v40 = vld [vmem:[%s2505_s3 + $0xc] sm:$0x3] }
 0x437   : > { %1145 = vmatpush.bf16.msrb.mxu2 %v1130_v42 }
 0x43a   : > { %1849 = vmatmul.msk.bf16.vlgmr.msrb.gmra.mxu2 %vm2533_vm12, %v1848_v43  ;;  %vm2544_vm12 = vmmov %vm2538_vm1 }
 0x43c   : > { %v1195_v46 = vpop.permute.xlu1 %1194 }
 0x43d   : > { %v1197_v47 = vsel %vm2534_vm13, %v1193_v44, %v1195_v46  ;;  %v1208_v48 = vsel %vm219_vm0, %v1195_v46, 0  ;;  %v1191_v49 = vpop.permute.xlu0 %1190  ;;  %vm2545_vm13 = vmmov %vm2538_vm1 }
 0x43e   : > { %v1205_v50 = vsel %vm219_vm0, %v1197_v47, 0  ;;  %v1196_v51 = vsel %vm2535_vm10, %v1191_v49, %v1193_v44  ;;  %1243 = vmatpush.bf16.msra.mxu3 %v1208_v48  ;;  %vm2546_vm10 = vmmov %vm2538_vm1 }
 0x43f   : > { %v1202_v52 = vsel %vm219_vm0, %v1196_v51, 0  ;;  %1230 = vmatpush.bf16.msra.mxu2 %v1205_v50 }
 0x440   : > { %1217 = vmatpush.bf16.msra.mxu1 %v1202_v52  ;;  %1851 = vmatmul.msk.bf16.vlgmr.msra.gmra.mxu0 %vm2536_vm8, %v1848_v43  ;;  %vm2547_vm8 = vmmov %vm2538_vm1 }
 0x441   : > { %1850 = vmatmul.msk.bf16.vlgmr.msrb.gmra.mxu3 %vm2537_vm4, %v1848_v43  ;;  %vm2548_vm4 = vmmov %vm2538_vm1 }
 0x443   : > { %1854 = vmatmul.msk.bf16.vlgmr.msra.gmra.mxu1 %vm2538_vm1, %v1853_v53  ;;  %vm2549_vm1 = vcmask 1031168  }
 0x445   : > { %v1267_v56 = vpop.permute.xlu1 %1266 }
 0x446   : > { %v1269_v57 = vsel %vm2539_vm11, %v1265_v55, %v1267_v56  ;;  %v1280_v59 = vsel %vm219_vm0, %v1267_v56, 0  ;;  %v1263_v60 = vpop.permute.xlu0 %1262  ;;  %vm2550_vm11 = vmmov %vm2548_vm4 }
 0x447   : > { %v1277_v61 = vsel %vm219_vm0, %v1269_v57, 0  ;;  %v1268_v62 = vsel %vm2540_vm14, %v1263_v60, %v1265_v55  ;;  %1315 = vmatpush.bf16.msrb.mxu2 %v1280_v59  ;;  %vm2551_vm14 = vmmov %vm2549_vm1 }
 0x448   : > { %v1274_v63 = vsel %vm219_vm0, %v1268_v62, 0  ;;  %1302 = vmatpush.bf16.msrb.mxu1 %v1277_v61  ;;  %v1453_v13 = vpop.permute.xlu2 %1452 }
 0x449   : > { %1289 = vmatpush.bf16.msrb.mxu0 %v1274_v63 }
 0x44a   : > { %1855 = vmatmul.msk.bf16.vlgmr.msra.gmra.mxu2 %vm2541_vm9, %v1853_v53  ;;  %vm2552_vm9 = vmmov %vm2548_vm4 }
 0x44b   : > { %1411 = vmatpush.bf16.msra.mxu2 %v1398_v1 }
 0x44e   : > { %v1337_v3 = vpop.permute.xlu1 %1336 }
 0x44f   : > { %v1339_v6 = vsel %vm2542_vm7, %v1335_v5, %v1337_v3  ;;  %v1350_v8 = vsel %vm219_vm0, %v1337_v3, 0  ;;  %v1333_v9 = vpop.permute.xlu0 %1332  ;;  %vm2553_vm7 = vcmask 891904  }
 0x450   : > { %v1347_v58 = vsel %vm219_vm0, %v1339_v6, 0  ;;  %v1338_v11 = vsel %vm2543_vm15, %v1333_v9, %v1335_v5  ;;  %1385 = vmatpush.bf16.msra.mxu1 %v1350_v8  ;;  %1859 = vmatmul.msk.bf16.vlgmr.msrb.gmra.mxu0 %vm2544_vm12, %v1858_v2  ;;  %vm2554_vm15 = vmmov %vm2548_vm4 }
 0x451   : > { %v1344_v12 = vsel %vm219_vm0, %v1338_v11, 0  ;;  %1372 = vmatpush.bf16.msra.mxu0 %v1347_v58  ;;  %1856 = vmatmul.msk.bf16.vlgmr.msra.gmra.mxu3 %vm2545_vm13, %v1853_v53  ;;  %v1519_v54 = vpop.permute.xlu2 %1518  ;;  %vm2555_vm12 = vmmov %vm2553_vm7 }
 0x452   : > { %1359 = vmatpush.bf16.msrb.mxu3 %v1344_v12  ;;  %vm2556_vm13 = vmmov %vm2548_vm4 }
 0x453   : > { %1860 = vmatmul.msk.bf16.vlgmr.msrb.gmra.mxu1 %vm2546_vm10, %v1858_v2  ;;  %vm2557_vm10 = vmmov %vm2548_vm4 }
 0x455   : > { %1437 = vmatpush.bf16.msrb.mxu0 %v1402_v14 }
 0x456   : > { %1424 = vmatpush.bf16.msra.mxu3 %v1400_v16 }
 0x45a   : > { %1861 = vmatmul.msk.bf16.vlgmr.msrb.gmra.mxu2 %vm2547_vm8, %v1858_v2  ;;  %v1585_v32 = vpop.permute.xlu2 %1584  ;;  %vm2558_vm8 = vcmask 752640  }
 0x460   : > { %v1455_v19 = vpop.permute.xlu1 %1454  ;;  %1864 = vmatmul.msk.bf16.vlgmr.msra.gmra.mxu0 %vm2548_vm4, %v1862_v4 }
 0x461   : > { %v1457_v18 = vsel %vm2549_vm1, %v1453_v13, %v1455_v19  ;;  %v1468_v22 = vsel %vm219_vm0, %v1455_v19, 0  ;;  %v1451_v23 = vpop.permute.xlu0 %1450  ;;  %1863 = vmatmul.msk.bf16.vlgmr.msrb.gmra.mxu3 %vm2550_vm11, %v1862_v4  ;;  %vm2559_vm1 = vmmov %vm2558_vm8 }
 0x462   : > { %v1465_v15 = vsel %vm219_vm0, %v1457_v18, 0  ;;  %v1456_v24 = vsel %vm2551_vm14, %v1451_v23, %v1453_v13  ;;  %1503 = vmatpush.bf16.msrb.mxu3 %v1468_v22  ;;  %vm2560_vm11 = vmmov %vm2548_vm4 }
 0x463   : > { %v1462_v45 = vsel %vm219_vm0, %v1456_v24, 0  ;;  %1490 = vmatpush.bf16.msrb.mxu2 %v1465_v15  ;;  %1865 = vmatmul.msk.bf16.vlgmr.msra.gmra.mxu1 %vm2552_vm9, %v1862_v4  ;;  %vm2561_vm14 = vmmov %vm2548_vm4 }
 0x464   : > { %1477 = vmatpush.bf16.msrb.mxu1 %v1462_v45  ;;  %vm2562_vm9 = vmmov %vm2548_vm4 }
 0x469   : > { %v1521_v26 = vpop.permute.xlu1 %1520 }
 0x46a   : > { %v1523_v27 = vsel %vm2553_vm7, %v1519_v54, %v1521_v26  ;;  %v1534_v28 = vsel %vm219_vm0, %v1521_v26, 0  ;;  %v1517_v29 = vpop.permute.xlu0 %1516  ;;  %1866 = vmatmul.msk.bf16.vlgmr.msra.gmra.mxu2 %vm2554_vm15, %v1034_v25  ;;  %vm2563_vm7 = vmmov %vm2548_vm4 }
 0x46b   : > { %v1531_v21 = vsel %vm219_vm0, %v1523_v27, 0  ;;  %v1522_v20 = vsel %vm2555_vm12, %v1517_v29, %v1519_v54  ;;  %1569 = vmatpush.bf16.msra.mxu2 %v1534_v28  ;;  %vm2564_vm15 = vmmov %vm2548_vm4 }
 0x46c   : > { %v1528_v30 = vsel %vm219_vm0, %v1522_v20, 0  ;;  %1556 = vmatpush.bf16.msra.mxu1 %v1531_v21 }
 0x46d   : > { %1543 = vmatpush.bf16.msra.mxu0 %v1528_v30 }
 0x470   : > { %1868 = vmatmul.msk.bf16.vlgmr.msrb.gmra.mxu0 %vm2556_vm13, %v1034_v25 }
 0x471   : > { %1867 = vmatmul.msk.bf16.vlgmr.msra.gmra.mxu3 %vm2557_vm10, %v1034_v25  ;;  %vm2568_vm10 = vcmask 257024  }
 0x472   : > { %v1587_v33 = vpop.permute.xlu1 %1586 }
 0x473   : > { %v1589_v34 = vsel %vm2558_vm8, %v1585_v32, %v1587_v33  ;;  %v1600_v35 = vsel %vm219_vm0, %v1587_v33, 0  ;;  %v1583_v36 = vpop.permute.xlu0 %1582  ;;  %1869 = vmatmul.msk.bf16.vlgmr.msrb.gmra.mxu1 %vm2548_vm4, %v1847_v31  ;;  %v1703_v33 = vld.sshfl [vmem:[#allocation1 + $0x8] sm:$0xff pattern:$0x75316420] }
 0x474   : > { %v1597_v0 = vsel %vm219_vm0, %v1589_v34, 0  ;;  %v1588_v37 = vsel %vm2559_vm1, %v1583_v36, %v1585_v32  ;;  %1635 = vmatpush.bf16.msrb.mxu1 %v1600_v35  ;;  %1707 = vrot.lane.b32.xlu1 %v1703_v33, %s2022_s12  ;;  %v1704_v36 = vld.sshfl [vmem:[#allocation1 + $0x10] sm:$0xff pattern:$0x75316420] }
 0x475   : > { %v1594_v38 = vsel %vm219_vm0, %v1588_v37, 0  ;;  %1622 = vmatpush.bf16.msrb.mxu0 %v1597_v0  ;;  %vm2565_vm0 = vmmov %vm2548_vm4  ;;  %vm2570_vm4 = vcmask 891904  }
 0x476   : > { %1609 = vmatpush.bf16.msra.mxu3 %v1594_v38  ;;  %vm2566_vm12 = vmmov %vm2565_vm0 }
 0x477   : > { %vm2567_vm13 = vmmov %vm2565_vm0 }
 0x478   : > { %vm2571_vm1 = vmmov %vm2570_vm4 }
 0x47a   : > { %1870 = vmatmul.msk.bf16.vlgmr.msrb.gmra.mxu2 %vm2560_vm11, %v1847_v31 }
 0x47c   : > { %1709 = vrot.lane.b32.xlu1 %v1704_v36, %s2022_s12 }
 0x480   : > { %1872 = vmatmul.msk.bf16.vlgmr.msra.gmra.mxu0 %vm2561_vm14, %v1852_v39 }
 0x481   : > { %1871 = vmatmul.msk.bf16.vlgmr.msrb.gmra.mxu3 %vm2562_vm9, %v1847_v31 }
 0x483   : > { %1873 = vmatmul.msk.bf16.vlgmr.msra.gmra.mxu1 %vm2563_vm7, %v1852_v39 }
 0x48a   : > { %1874 = vmatmul.msk.bf16.vlgmr.msra.gmra.mxu2 %vm2564_vm15, %v1852_v39 }
 0x490   : > { %1876 = vmatmul.msk.bf16.vlgmr.msrb.gmra.mxu0 %vm2565_vm0, %v1857_v40 }
 0x491   : > { %1875 = vmatmul.msk.bf16.vlgmr.msra.gmra.mxu3 %vm2566_vm12, %v1857_v40 }
 0x493   : > { %1877 = vmatmul.msk.bf16.vlgmr.msrb.gmra.mxu1 %vm2567_vm13, %v1857_v40 }
 0x4ac   : > { %v1101_v41 = vpop.f32.mrf.mxu1 }
 0x4ad   : > { %v1088_v42 = vpop.f32.mrf.mxu0 }
 0x4b4   : > { %v1075_v43 = vpop.f32.mrf.mxu3  ;;  %v1103_v44 = vpop.f32.mrf.mxu1 }
 0x4b5   : > { %v1090_v46 = vpop.f32.mrf.mxu0 }
 0x4bc   : > { %v1077_v47 = vpop.f32.mrf.mxu3 }
 0x4bd   : > { %v1147_v48 = vpop.f32.mrf.mxu2  ;;  %v1173_v49 = vpop.f32.mrf.mxu0 }
 0x4c0   : > { %v2444_v50 = vpop.f32.mrf.mxu1 }
 0x4c4   : > { %v1160_v51 = vpop.f32.mrf.mxu3 }
 0x4c5   : > { %v1149_v52 = vpop.f32.mrf.mxu2  ;;  %v1175_v53 = vpop.f32.mrf.mxu0 }
 0x4c8   : > { %v1221_v55 = vpop.f32.mrf.mxu1 }
 0x4cc   : > { %v1162_v56 = vpop.f32.mrf.mxu3 }
 0x4cd   : > { %v1232_v57 = vpop.f32.mrf.mxu2  ;;  %v1291_v59 = vpop.f32.mrf.mxu0 }
 0x4d0   : > { %v1304_v60 = vpop.f32.mrf.mxu1 }
 0x4d4   : > { %v1245_v61 = vpop.f32.mrf.mxu3 }
 0x4d5   : > { %v1234_v62 = vpop.f32.mrf.mxu2  ;;  %v1293_v63 = vpop.f32.mrf.mxu0 }
 0x4d8   : > { %v1306_v1 = vpop.f32.mrf.mxu1 }
 0x4dc   : > { %v1247_v2 = vpop.f32.mrf.mxu3 }
 0x4dd   : > { %v1317_v5 = vpop.f32.mrf.mxu2  ;;  %v1374_v3 = vpop.f32.mrf.mxu0 }
 0x4e0   : > { %v1387_v6 = vpop.f32.mrf.mxu1 }
 0x4e4   : > { %v1361_v8 = vpop.f32.mrf.mxu3 }
 0x4e5   : > { %v1319_v9 = vpop.f32.mrf.mxu2  ;;  %v1376_v58 = vpop.f32.mrf.mxu0 }
 0x4e8   : > { %v1389_v11 = vpop.f32.mrf.mxu1 }
 0x4ec   : > { %v1363_v12 = vpop.f32.mrf.mxu3 }
 0x4ed   : > { %v1413_v14 = vpop.f32.mrf.mxu2  ;;  %v1439_v16 = vpop.f32.mrf.mxu0 }
 0x4ee   : > { %v1414_v13 = vadd.f32 %v1413_v14, %v1075_v43  ;;  %v1440_v20 = vadd.f32 %v1439_v16, %v1101_v41 }
 0x4f0   : > { %v1479_v4 = vpop.f32.mrf.mxu1 }
 0x4f1   : > { %v1480_v19 = vadd.f32 %v1479_v4, %v1147_v48  ;;  %v1702_v48 = vld.sshfl [vmem:[#allocation1] sm:$0xff pattern:$0x75316420] }
 0x4f2   : > { %1705 = vrot.lane.b32.xlu1 %v1702_v48, %s2022_s12  ;;  %s188_s12 = sand.u32 1, %s2006_s16  }
 0x4f3   : > { %v1641_v18 = vadd.f32 %v1480_v19, %v1414_v13  ;;  %s1881_s8 = smul.u32 12, %s188_s12  ;;  %s1728_s23 = scalar_lea.sflag [#allocation5], %s188_s12 }
 0x4f4   : > { %v1426_v22 = vpop.f32.mrf.mxu3 }
 0x4f5   : > { %v1415_v23 = vpop.f32.mrf.mxu2  ;;  %v1441_v15 = vpop.f32.mrf.mxu0  ;;  %v1427_v26 = vadd.f32 %v1426_v22, %v1088_v42  ;;  %s190_s19 = scalar_lea.vmem [#allocation4], %s1881_s8 }
 0x4f6   : > { %s1741_s13 = sshll.u32 %s190_s19, 4  ;;  %s1742_s13 = int_to_ptr.vmem [resolvable:$true] %s1741_s13 }
 0x4f8   : > { %v1481_v24 = vpop.f32.mrf.mxu1 }
 0x4fc   : > { %v1428_v45 = vpop.f32.mrf.mxu3 }
 0x4fd   : > { %v1492_v25 = vpop.f32.mrf.mxu2  ;;  %v1545_v54 = vpop.f32.mrf.mxu0 }
 0x4fe   : > { %v1493_v27 = vadd.f32 %v1492_v25, %v1160_v51  ;;  %v1546_v51 = vadd.f32 %v1545_v54, %v2444_v50  ;;  %v1708_v25 = vpop.permute.xlu1 %1707 }
 0x500   : > { %v1642_v28 = vadd.f32 %v1493_v27, %v1427_v26  ;;  %v1558_v29 = vpop.f32.mrf.mxu1 }
 0x501   : > { %v1559_v39 = vadd.f32 %v1558_v29, %v1232_v57 }
 0x504   : > { %v1505_v21 = vpop.f32.mrf.mxu3 }
 0x505   : > { %v1494_v30 = vpop.f32.mrf.mxu2  ;;  %v1506_v31 = vadd.f32 %v1505_v21, %v1173_v49  ;;  %v1547_v32 = vpop.f32.mrf.mxu0 }
 0x506   : > { %v1710_v27 = vpop.permute.xlu1 %1709 }
 0x507   : > { %v1643_v34 = vadd.f32 %v1506_v31, %v1440_v20 }
 0x508   : > { %v1560_v35 = vpop.f32.mrf.mxu1 }
 0x50c   : > { %v1507_v0 = vpop.f32.mrf.mxu3 }
 0x50d   : > { %v1571_v37 = vpop.f32.mrf.mxu2  ;;  %v1624_v38 = vpop.f32.mrf.mxu0 }
 0x50e   : > { %v1625_v40 = vadd.f32 %v1624_v38, %v1304_v60  ;;  %v1572_v44 = vadd.f32 %v1571_v37, %v1245_v61  ;;  %v1713_v37 = vsel %vm2570_vm4, %v1708_v25, %v1710_v27 }
 0x510   : > { %v1645_v42 = vadd.f32 %v1625_v40, %v1559_v39  ;;  %v1637_v43 = vpop.f32.mrf.mxu1 }
 0x511   : > { %v1638_v41 = vadd.f32 %v1637_v43, %v1317_v5 }
 0x512   : > { %v1648_v46 = vadd.f32 %v1645_v42, %v1642_v28 }
 0x513   : > { %v1646_v47 = vadd.f32 %v1638_v41, %v1572_v44 }
 0x514   : > { %v1611_v49 = vpop.f32.mrf.mxu3  ;;  %v1651_v52 = vadd.f32 %v1648_v46, %v1374_v3 }
 0x515   : > { %v1649_v53 = vadd.f32 %v1646_v47, %v1643_v34  ;;  %v1612_v55 = vadd.f32 %v1611_v49, %v1291_v59  ;;  %v1626_v56 = vpop.f32.mrf.mxu0  ;;  %v1573_v62 = vpop.f32.mrf.mxu2 }
 0x516   : > { %v1654_v61 = vsel %vm2258_vm3, %v1651_v52, 0.0  ;;  %vm2569_vm3 = vmmov %vm2568_vm10 }
 0x517   : > { %v1644_v57 = vadd.f32 %v1612_v55, %v1546_v51  ;;  %v1652_v60 = vadd.f32 %v1649_v53, %v1387_v6  ;;  %v1664_v50 = vmul.f32 %v1654_v61, %v1654_v61  ;;  %v1657_v58 = vsel %vm227_vm5, %v1654_v61, 0.0  ;;  %vm2572_vm11 = vmmov %vm2569_vm3 }
 0x518   : > { %v1639_v63 = vpop.f32.mrf.mxu1 }
 0x519   : > { %v1647_v1 = vadd.f32 %v1644_v57, %v1641_v18  ;;  %v1655_v5 = vsel %vm2268_vm2, %v1652_v60, 0.0 }
 0x51a   : > { %v1665_v6 = vmul.f32 %v1655_v5, %v1655_v5  ;;  %v1659_v14 = vsel %vm2568_vm10, %v1655_v5, 0.0 }
 0x51b   : > { %v1650_v2 = vadd.f32 %v1647_v1, %v1361_v8  ;;  %v1667_v8 = vsel %vm227_vm5, %v1664_v50, 0.0 }
 0x51c   : > { %v1613_v9 = vpop.f32.mrf.mxu3  ;;  %v1669_v4 = vsel %vm2569_vm3, %v1665_v6, 0.0 }
 0x51d   : > { %v1653_v59 = vsel %vm2264_vm6, %v1650_v2, 0.0 }
 0x51e   : > { %v1656_v3 = vsel %vm227_vm5, %v1653_v59, 0.0  ;;  %v1663_v11 = vmul.f32 %v1653_v59, %v1653_v59 }
 0x51f   : > { %v1658_v12 = vadd.f32 %v1657_v58, %v1656_v3 }
 0x520   : > { %v1666_v7 = vsel %vm227_vm5, %v1663_v11, 0.0 }
 0x521   : > { %v1660_v10 = vadd.f32 %v1659_v14, %v1658_v12  ;;  %v1668_v16 = vadd.f32 %v1667_v8, %v1666_v7 }
 0x523   : > { %1661 = vadd.xlane.f32.xlu0 %v1660_v10  ;;  %v1670_v17 = vadd.f32 %v1669_v4, %v1668_v16 }
 0x525   : > { %1671 = vadd.xlane.f32.xlu2 %v1670_v17 }
 0x564   : > { %v1706_v36 = vpop.permute.xlu1 %1705 }
 0x565   : > { %v1712_v40 = vsel %vm2571_vm1, %v1706_v36, %v1708_v25 }
 0x596   : > { %v1662_v13 = vpop.xlane.xlu0 %1661 }
 0x597   : > { %v1673_v19 = vmul.f32 0.00390625, %v1662_v13 }
 0x598   : > { %v1672_v18 = vpop.xlane.xlu2 %1671 }
 0x599   : > { %v1674_v22 = vmul.f32 0.00390625, %v1672_v18  ;;  %v1675_v23 = vmul.f32 %v1673_v19, %v1673_v19  ;;  %v1679_v30 = vsub.f32 %v1651_v52, %v1673_v19  ;;  %v1680_v31 = vsub.f32 %v1652_v60, %v1673_v19 }
 0x59a   : > { %v1678_v32 = vsub.f32 %v1650_v2, %v1673_v19 }
 0x59b   : > { %v1676_v15 = vsub.f32 %v1674_v22, %v1675_v23 }
 0x59d   : > { %v1677_v24 = vmax.f32 %v1676_v15, 0.0 }
 0x59f   : > { %v1681_v45 = vadd.f32 1e-05, %v1677_v24 }
 0x5a1   : > { %1950 = vrsqrt.f32 %v1681_v45  ;;  %vm1688_vm2 = vweird.f32 %v1681_v45 }
 0x5a7   : > { %v1951_v54 = vpop.eup %1950 }
 0x5a8   : > { %v1683_v26 = vmul.f32 %v1951_v54, %v1681_v45  ;;  %vm1689_vm6 = vweird.f32 %v1951_v54 }
 0x5a9   : > { %vm1690_vm8 = vmor %vm1688_vm2, %vm1689_vm6 }
 0x5aa   : > { %v1684_v28 = vmul.f32 %v1951_v54, %v1683_v26 }
 0x5ac   : > { %v1685_v29 = vmul.f32 0.5, %v1684_v28 }
 0x5ae   : > { %v1686_v21 = vsub.f32 1.5, %v1685_v29 }
 0x5b0   : > { %v1687_v20 = vmul.f32 %v1951_v54, %v1686_v21 }
 0x5b2   : > { %v1691_v33 = vsel %vm1690_vm8, %v1951_v54, %v1687_v20 }
 0x5b3   : > { %v1693_v34 = vmul.f32 %v1691_v33, %v1679_v30  ;;  %v1694_v35 = vmul.f32 %v1691_v33, %v1680_v31  ;;  %v1692_v0 = vmul.f32 %v1691_v33, %v1678_v32 }
 0x5b5   : > { %v1718_v38 = vadd.f32 %v1713_v37, %v1693_v34  ;;  %v1719_v39 = vadd.f32 %v1710_v27, %v1694_v35  ;;  %v1717_v43 = vadd.f32 %v1712_v40, %v1692_v0 }
 0x5b7   : > { %v1722_v42 = vrot.slane %v1718_v38, 4  ;;  %1726 = vst.msk [vmem:[%s190_s19 + $0x8] sm:$0xf] %vm2572_vm11, %v1719_v39 }
 0x5b9   : > { %v1723_v44 = vsel %vm227_vm5, %v1717_v43, %v1722_v42 }
 0x5ba   : > { %1725 = vst [vmem:[%s190_s19] sm:$0xff] %v1723_v44 }
 0x5bb   : > { %1979 = shalt.err (!%p1976_p3)
}
 0x5bc   : > { %1884 = dma.vmem_to_hbm [thread:$0]  (%p2094_p5), %s1742_s13, 192, %s1744_s22, %s1728_s23  }
 0x5bd PF: > { %p1890_p4 = scmp.ge.s32.totalorder %s2014_s18, 2  ;;  %s1755_s6 = sand.u32 1, %s2002_s15  }
 0x5be   : > { %s1756_s12 = scalar_lea.sflag [#allocation5], %s1755_s6 }
 0x5bf   : > { %p1887_p7 = pnand %p1890_p4, %p2098_p6 }
 0x5c1   : > { %p1888_p8 = pneg %p1887_p7 }
 0x5c3   : > { %1997 = dma.done.wait (%p1888_p8), %s1756_s12, 192  }
 0x5c4   : > { %1999 = vsyncadd (%p1888_p8), %s1756_s12, 4294967104  ;;  %p14_p9 = scmp.ge.s32.totalorder %s2081_s21, 4   ;;  %s2573_s15 = smov %s2006_s16 }
 0x5c5   : > { %s2574_s16 = smov %s2010_s17  ;;  %s2575_s17 = smov %s2092_s24 }
 0x5c6   : > { %s2576_s18 = smov %s2081_s21  ;;  %16 = sbr.rel (!%p14_p9) target bundleno = 3 (0x3), region = 89 }
 0x5cb   :  { %1762 = vsyncpa [#allocation5], 1 }
 0x5cc   :  { %1764 = vsyncpa [#allocation5 + $0x1], 1 }

</bundles_post_ra>
